<compile_context>
chip_gen: v7x
topology: tpu7x:2x2x1
jax: 0.10.0
libtpu: 0.0.40
codegen_flags: <defaults>
</compile_context>

<pallas_src>
import functools

import jax
import jax.numpy as jnp
from jax import lax
from jax.experimental import pallas as pl
from jax.experimental.pallas import tpu as pltpu

LANE = 128                       # pad every channel dim to the 128-lane vreg width
CONV1_K, CONV1_S = 8, 4
CONV2_K, CONV2_S = 4, 2
CONV3_K, CONV3_S = 3, 1


def _conv_out(size, k, s):
    return (size - k) // s + 1


def _pad_last(a, n):
    return jnp.pad(a, [(0, 0)] * (a.ndim - 1) + [(0, n - a.shape[-1])])


# -----------------------------------------------------------------------------
# Fused Pallas kernel: conv1 + conv2 + conv3 + fc1 + fc2, all in VMEM.
# Activations are position-major: row = (output_position * batch + b).
# -----------------------------------------------------------------------------
def _fused_qr_dqn_kernel(p1_ref, w1_ref, b1_ref, w2_ref, b2_ref, w3_ref, b3_ref,
                         wf1_ref, bf1_ref, wf2_ref, bf2_ref, o_ref,
                         *, batch, oh1, ow1, oh2, ow2, oh3, ow3):
    f32, bf16 = jnp.float32, jnp.bfloat16

    def mm(x, w):                           # bf16 MXU operands, f32 accumulation
        return jnp.dot(x.astype(bf16), w, preferred_element_type=f32)

    # ---- conv1: all (position, batch) rows in ONE lane-dense MXU matmul
    a1 = jnp.maximum(mm(p1_ref[...], w1_ref[...]) + b1_ref[...], 0.0).astype(bf16)

    # ---- conv2: in-kernel im2col (static unrolled indices), then one big matmul
    rows2 = []
    for oi in range(oh2):
        for oj in range(ow2):
            taps = [a1[((CONV2_S * oi + di) * ow1 + (CONV2_S * oj + dj)) * batch:
                       ((CONV2_S * oi + di) * ow1 + (CONV2_S * oj + dj) + 1) * batch, :]
                    for di in range(CONV2_K) for dj in range(CONV2_K)]
            rows2.append(jnp.concatenate(taps, axis=-1))          # (B, 16*128)
    p2 = rows2[0] if len(rows2) == 1 else jnp.concatenate(rows2, axis=0)
    a2 = jnp.maximum(mm(p2, w2_ref[...]) + b2_ref[...], 0.0).astype(bf16)

    # ---- conv3: same pattern, taps are contiguous sublane blocks of a2
    rows3 = []
    for oi in range(oh3):
        for oj in range(ow3):
            taps = [a2[((oi + di) * ow2 + (oj + dj)) * batch:
                       ((oi + di) * ow2 + (oj + dj) + 1) * batch, :]
                    for di in range(CONV3_K) for dj in range(CONV3_K)]
            rows3.append(jnp.concatenate(taps, axis=-1))          # (B, 9*128)
    p3 = rows3[0] if len(rows3) == 1 else jnp.concatenate(rows3, axis=0)
    a3 = jnp.maximum(mm(p3, w3_ref[...]) + b3_ref[...], 0.0).astype(bf16)

    # ---- fc1: PyTorch .view flatten == lane-concat of conv3 positions
    #           (fc1 weight columns were pre-permuted to (i, j, c_pad) order)
    n3 = oh3 * ow3
    blocks = [a3[p * batch:(p + 1) * batch, :] for p in range(n3)]
    flat = blocks[0] if n3 == 1 else jnp.concatenate(blocks, axis=-1)
    hid = jnp.maximum(mm(flat, wf1_ref[...]) + bf1_ref[...], 0.0)  # (B, 512)

    # ---- fc2: lane-dense padded output; wrapper slices the real outputs
    o_ref[...] = (mm(hid, wf2_ref[...]) + bf2_ref[...]).astype(o_ref.dtype)


# -----------------------------------------------------------------------------
# Parameter preparation (done ONCE): PyTorch layouts -> kernel layouts.
# -----------------------------------------------------------------------------
def init_params(key, in_channels, num_outputs, fc_in):
    """Parameters in PyTorch layout (same as the nn.Module)."""
    ks = jax.random.split(key, 10)
    s = 0.05
    return {
        "conv1_w": jax.random.normal(ks[0], (32, in_channels, 8, 8), jnp.float32) * s,
        "conv1_b": jax.random.normal(ks[1], (32,), jnp.float32) * s,
        "conv2_w": jax.random.normal(ks[2], (64, 32, 4, 4), jnp.float32) * s,
        "conv2_b": jax.random.normal(ks[3], (64,), jnp.float32) * s,
        "conv3_w": jax.random.normal(ks[4], (64, 64, 3, 3), jnp.float32) * s,
        "conv3_b": jax.random.normal(ks[5], (64,), jnp.float32) * s,
        "fc1_w": jax.random.normal(ks[6], (512, fc_in), jnp.float32) * s,  # (out, in)
        "fc1_b": jax.random.normal(ks[7], (512,), jnp.float32) * s,
        "fc2_w": jax.random.normal(ks[8], (num_outputs, 512), jnp.float32) * s,
        "fc2_b": jax.random.normal(ks[9], (num_outputs,), jnp.float32) * s,
    }


def prepare_params(params, input_hw, num_outputs):
    """One-time: transpose/pad weights to kernel layout (bf16 operands, f32 bias)."""
    H, W = input_hw
    oh1, ow1 = _conv_out(H, CONV1_K, CONV1_S), _conv_out(W, CONV1_K, CONV1_S)
    oh2, ow2 = _conv_out(oh1, CONV2_K, CONV2_S), _conv_out(ow1, CONV2_K, CONV2_S)
    oh3, ow3 = _conv_out(oh2, CONV3_K, CONV3_S), _conv_out(ow2, CONV3_K, CONV3_S)
    n_out_pad = -(-num_outputs // LANE) * LANE

    f32, bf16 = jnp.float32, jnp.bfloat16
    oc1 = params["conv1_w"].shape[0]
    oc3 = params["conv3_w"].shape[0]
    fc1_n = params["fc1_w"].shape[0]

    # conv1: (OC, C, k, k) -> (C*k*k, OCpad); feature order (c, kh, kw) matches patches
    w1 = _pad_last(params["conv1_w"].reshape(oc1, -1).T, LANE).astype(bf16)
    b1 = _pad_last(params["conv1_b"][None, :], LANE).astype(f32)

    # conv2: (OC, C, k, k) -> (k, k, Cpad, OCpad) -> (k*k*128, 128)
    w2 = params["conv2_w"].transpose(2, 3, 1, 0)
    w2 = jnp.pad(w2, ((0, 0), (0, 0), (0, LANE - w2.shape[2]), (0, LANE - w2.shape[3])))
    w2 = w2.reshape(CONV2_K * CONV2_K * LANE, LANE).astype(bf16)
    b2 = _pad_last(params["conv2_b"][None, :], LANE).astype(f32)

    # conv3: same layout as conv2
    w3 = params["conv3_w"].transpose(2, 3, 1, 0)
    w3 = jnp.pad(w3, ((0, 0), (0, 0), (0, LANE - w3.shape[2]), (0, LANE - w3.shape[3])))
    w3 = w3.reshape(CONV3_K * CONV3_K * LANE, LANE).astype(bf16)
    b3 = _pad_last(params["conv3_b"][None, :], LANE).astype(f32)

    # fc1: torch flatten order is (c, i, j); permute columns to (i, j, c_pad) so the
    # kernel can feed it the lane-concat of conv3 positions directly.
    wf1 = params["fc1_w"].reshape(fc1_n, oc3, oh3, ow3).transpose(0, 2, 3, 1)
    wf1 = jnp.pad(wf1, ((0, 0), (0, 0), (0, 0), (0, LANE - oc3)))
    wf1 = wf1.reshape(fc1_n, oh3 * ow3 * LANE).T.astype(bf16)     # (H3*W3*128, 512)
    bf1 = params["fc1_b"][None, :].astype(f32)

    # fc2: (num_outputs, 512) -> (512, n_out_pad)
    wf2 = _pad_last(params["fc2_w"].T, n_out_pad).astype(bf16)
    bf2 = _pad_last(params["fc2_b"][None, :], n_out_pad).astype(f32)

    return {"w1": w1, "b1": b1, "w2": w2, "b2": b2, "w3": w3, "b3": b3,
            "wf1": wf1, "bf1": bf1, "wf2": wf2, "bf2": bf2}


# -----------------------------------------------------------------------------
# Forward pass (thin XLA glue around one pallas_call)
# -----------------------------------------------------------------------------
def qr_dqn_forward(prep, x, *, num_actions, num_quantiles):
    B, C, H, W = x.shape
    oh1, ow1 = _conv_out(H, CONV1_K, CONV1_S), _conv_out(W, CONV1_K, CONV1_S)
    oh2, ow2 = _conv_out(oh1, CONV2_K, CONV2_S), _conv_out(ow1, CONV2_K, CONV2_S)
    oh3, ow3 = _conv_out(oh2, CONV3_K, CONV3_S), _conv_out(ow2, CONV3_K, CONV3_S)
    n_out_pad = prep["wf2"].shape[1]

    # conv1 patches via one fused XLA op; feature order (c, kh, kw) matches the
    # (C*k*k, OC) weight layout built in prepare_params.  Rows are emitted
    # POSITION-MAJOR ((oi, oj, b)) so in-kernel taps are contiguous sublane blocks.
    patches = lax.conv_general_dilated_patches(
        x.astype(jnp.bfloat16),
        filter_shape=(CONV1_K, CONV1_K),
        window_strides=(CONV1_S, CONV1_S),
        padding="VALID",
        dimension_numbers=("NCHW", "OIHW", "NHWC"))           # (B, oh1, ow1, C*k*k)
    p1 = patches.transpose(1, 2, 0, 3).reshape(oh1 * ow1 * B, C * CONV1_K * CONV1_K)

    inputs = (p1, prep["w1"], prep["b1"], prep["w2"], prep["b2"],
              prep["w3"], prep["b3"], prep["wf1"], prep["bf1"],
              prep["wf2"], prep["bf2"])

    flops = 2 * (p1.shape[0] * p1.shape[1] * LANE
                 + B * oh2 * ow2 * prep["w2"].shape[0] * LANE
                 + B * oh3 * ow3 * prep["w3"].shape[0] * LANE
                 + B * prep["wf1"].shape[0] * prep["wf1"].shape[1]
                 + B * prep["wf1"].shape[1] * n_out_pad)
    bytes_accessed = int(sum(a.size * a.dtype.itemsize for a in inputs)
                         + B * n_out_pad * 4)

    kernel = functools.partial(
        _fused_qr_dqn_kernel, batch=B,
        oh1=oh1, ow1=ow1, oh2=oh2, ow2=ow2, oh3=oh3, ow3=ow3)

    out = pl.pallas_call(
        kernel,
        out_shape=jax.ShapeDtypeStruct((B, n_out_pad), jnp.float32),
        grid=(1,),
        in_specs=[pl.BlockSpec(a.shape, lambda i: (0, 0)) for a in inputs],
        out_specs=pl.BlockSpec((B, n_out_pad), lambda i: (0, 0)),
        compiler_params=pltpu.CompilerParams(
            dimension_semantics=("arbitrary",),
            vmem_limit_bytes=64 * 1024 * 1024),
        cost_estimate=pl.CostEstimate(flops=flops, transcendentals=0,
                                      bytes_accessed=bytes_accessed),
    )(*inputs)

    y = out[:, :num_actions * num_quantiles]
    return y.reshape(B, num_actions, num_quantiles)


# -----------------------------------------------------------------------------
# Pure-JAX reference (PyTorch-layout params, f32) for the correctness check.
# -----------------------------------------------------------------------------
def _ref_conv(x, w, b, stride, relu):
    out = lax.conv_general_dilated(
        x, w, window_strides=(stride, stride), padding="VALID",
        dimension_numbers=("NCHW", "OIHW", "NCHW"))
    out = out + b[None, :, None, None]
    return jnp.maximum(out, 0.0) if relu else out


def qr_dqn_reference(params, x, *, num_actions, num_quantiles):
    h = _ref_conv(x, params["conv1_w"], params["conv1_b"], 4, True)
    h = _ref_conv(h, params["conv2_w"], params["conv2_b"], 2, True)
    h = _ref_conv(h, params["conv3_w"], params["conv3_b"], 1, True)
    B = h.shape[0]
    flat = h.reshape(B, -1)
    h = jnp.maximum(flat @ params["fc1_w"].T + params["fc1_b"], 0.0)
    y = h @ params["fc2_w"].T + params["fc2_b"]
    return y.reshape(B, num_actions, num_quantiles)


if __name__ == "__main__":
    # batch=2, 4 input channels, 36x36 spatial (minimum for the 8/4 -> 4/2 -> 3/1 stack)
    # conv spatial: 36 -> 8 -> 3 -> 1  =>  fc1 input = 64*1*1 = 64
    B, C, S = 2, 4, 36
    num_quantiles = 25
    num_actions = 4
    num_outputs = num_actions * num_quantiles   # 100

    oh1 = _conv_out(S, CONV1_K, CONV1_S)
    oh2 = _conv_out(oh1, CONV2_K, CONV2_S)
    oh3 = _conv_out(oh2, CONV3_K, CONV3_S)
    fc_in = 64 * oh3 * oh3

    key = jax.random.PRNGKey(0)
    kx, kp = jax.random.split(key)
    x = jax.random.normal(kx, (B, C, S, S), jnp.float32)
    params = init_params(kp, C, num_outputs, fc_in)
    prep = prepare_params(params, (S, S), num_outputs)          # one-time layout prep

    fwd = jax.jit(functools.partial(
        qr_dqn_forward, num_actions=num_actions, num_quantiles=num_quantiles))
    y = jax.block_until_ready(fwd(prep, x))

    assert y.shape == (B, num_actions, num_quantiles), y.shape

    y_ref = qr_dqn_reference(params, x, num_actions=num_actions,
                             num_quantiles=num_quantiles)
    if not jnp.allclose(y, y_ref, atol=3e-2, rtol=3e-2):
        max_err = float(jnp.max(jnp.abs(y - y_ref)))
        raise AssertionError(f"Pallas output mismatch, max_abs_err={max_err}")

    print("KERNEL_OK")
</pallas_src>

<mosaic_0001>
module attributes {stable_mosaic.version = 11 : i64} {
  func.func @_fused_qr_dqn_kernel(%arg0: i32, %arg1: memref<128x256xbf16, #tpu.memory_space<vmem>>, %arg2: memref<256x128xbf16, #tpu.memory_space<vmem>>, %arg3: memref<1x128xf32, #tpu.memory_space<vmem>>, %arg4: memref<2048x128xbf16, #tpu.memory_space<vmem>>, %arg5: memref<1x128xf32, #tpu.memory_space<vmem>>, %arg6: memref<1152x128xbf16, #tpu.memory_space<vmem>>, %arg7: memref<1x128xf32, #tpu.memory_space<vmem>>, %arg8: memref<128x512xbf16, #tpu.memory_space<vmem>>, %arg9: memref<1x512xf32, #tpu.memory_space<vmem>>, %arg10: memref<512x128xbf16, #tpu.memory_space<vmem>>, %arg11: memref<1x128xf32, #tpu.memory_space<vmem>>, %arg12: memref<2x128xf32, #tpu.memory_space<vmem>>) attributes {dimension_semantics = [#tpu.dimension_semantics<arbitrary>], iteration_bounds = array<i64: 1>, scalar_prefetch = 0 : i64, scratch_operands = 0 : i64, tpu.core_type = #tpu.core_type<tc>, window_params = [{pipeline_mode = #tpu.pipeline_mode<synchronous>, transform_indices = @transform_0, window_bounds = array<i64: 128, 256>}, {pipeline_mode = #tpu.pipeline_mode<synchronous>, transform_indices = @transform_1, window_bounds = array<i64: 256, 128>}, {pipeline_mode = #tpu.pipeline_mode<synchronous>, transform_indices = @transform_2, window_bounds = array<i64: 1, 128>}, {pipeline_mode = #tpu.pipeline_mode<synchronous>, transform_indices = @transform_3, window_bounds = array<i64: 2048, 128>}, {pipeline_mode = #tpu.pipeline_mode<synchronous>, transform_indices = @transform_4, window_bounds = array<i64: 1, 128>}, {pipeline_mode = #tpu.pipeline_mode<synchronous>, transform_indices = @transform_5, window_bounds = array<i64: 1152, 128>}, {pipeline_mode = #tpu.pipeline_mode<synchronous>, transform_indices = @transform_6, window_bounds = array<i64: 1, 128>}, {pipeline_mode = #tpu.pipeline_mode<synchronous>, transform_indices = @transform_7, window_bounds = array<i64: 128, 512>}, {pipeline_mode = #tpu.pipeline_mode<synchronous>, transform_indices = @transform_8, window_bounds = array<i64: 1, 512>}, {pipeline_mode = #tpu.pipeline_mode<synchronous>, transform_indices = @transform_9, window_bounds = array<i64: 512, 128>}, {pipeline_mode = #tpu.pipeline_mode<synchronous>, transform_indices = @transform_10, window_bounds = array<i64: 1, 128>}, {pipeline_mode = #tpu.pipeline_mode<synchronous>, transform_indices = @transform_11, window_bounds = array<i64: 2, 128>}]} {
    %c0 = arith.constant 0 : index
    %c0_0 = arith.constant 0 : index
    %0 = vector.load %arg1[%c0, %c0_0] : memref<128x256xbf16, #tpu.memory_space<vmem>>, vector<128x256xbf16>
    %c0_1 = arith.constant 0 : index
    %c0_2 = arith.constant 0 : index
    %1 = vector.load %arg2[%c0_1, %c0_2] : memref<256x128xbf16, #tpu.memory_space<vmem>>, vector<256x128xbf16>
    %cst = arith.constant dense<0.000000e+00> : vector<128x128xf32>
    %2 = tpu.matmul %0, %1, %cst {dimension_numbers = #tpu.dot_dimension_numbers<[1], [0], [0], [1], [0, 0, 1, 1], [], []>} : vector<128x256xbf16>, vector<256x128xbf16>, vector<128x128xf32> -> vector<128x128xf32>
    %c0_3 = arith.constant 0 : index
    %c0_4 = arith.constant 0 : index
    %3 = vector.load %arg3[%c0_3, %c0_4] : memref<1x128xf32, #tpu.memory_space<vmem>>, vector<1x128xf32>
    %4 = vector.broadcast %3 : vector<1x128xf32> to vector<128x128xf32>
    %5 = arith.addf %2, %4 : vector<128x128xf32>
    %cst_5 = arith.constant 0.000000e+00 : f32
    %6 = vector.broadcast %cst_5 : f32 to vector<128x128xf32>
    %7 = arith.maximumf %5, %6 : vector<128x128xf32>
    %8 = arith.truncf %7 : vector<128x128xf32> to vector<128x128xbf16>
    %9 = vector.extract_strided_slice %8 {offsets = [0, 0], sizes = [2, 128], strides = [1, 1]} : vector<128x128xbf16> to vector<2x128xbf16>
    %10 = vector.extract_strided_slice %8 {offsets = [2, 0], sizes = [2, 128], strides = [1, 1]} : vector<128x128xbf16> to vector<2x128xbf16>
    %11 = vector.extract_strided_slice %8 {offsets = [4, 0], sizes = [2, 128], strides = [1, 1]} : vector<128x128xbf16> to vector<2x128xbf16>
    %12 = vector.extract_strided_slice %8 {offsets = [6, 0], sizes = [2, 128], strides = [1, 1]} : vector<128x128xbf16> to vector<2x128xbf16>
    %13 = vector.extract_strided_slice %8 {offsets = [16, 0], sizes = [2, 128], strides = [1, 1]} : vector<128x128xbf16> to vector<2x128xbf16>
    %14 = vector.extract_strided_slice %8 {offsets = [18, 0], sizes = [2, 128], strides = [1, 1]} : vector<128x128xbf16> to vector<2x128xbf16>
    %15 = vector.extract_strided_slice %8 {offsets = [20, 0], sizes = [2, 128], strides = [1, 1]} : vector<128x128xbf16> to vector<2x128xbf16>
    %16 = vector.extract_strided_slice %8 {offsets = [22, 0], sizes = [2, 128], strides = [1, 1]} : vector<128x128xbf16> to vector<2x128xbf16>
    %17 = vector.extract_strided_slice %8 {offsets = [32, 0], sizes = [2, 128], strides = [1, 1]} : vector<128x128xbf16> to vector<2x128xbf16>
    %18 = vector.extract_strided_slice %8 {offsets = [34, 0], sizes = [2, 128], strides = [1, 1]} : vector<128x128xbf16> to vector<2x128xbf16>
    %19 = vector.extract_strided_slice %8 {offsets = [36, 0], sizes = [2, 128], strides = [1, 1]} : vector<128x128xbf16> to vector<2x128xbf16>
    %20 = vector.extract_strided_slice %8 {offsets = [38, 0], sizes = [2, 128], strides = [1, 1]} : vector<128x128xbf16> to vector<2x128xbf16>
    %21 = vector.extract_strided_slice %8 {offsets = [48, 0], sizes = [2, 128], strides = [1, 1]} : vector<128x128xbf16> to vector<2x128xbf16>
    %22 = vector.extract_strided_slice %8 {offsets = [50, 0], sizes = [2, 128], strides = [1, 1]} : vector<128x128xbf16> to vector<2x128xbf16>
    %23 = vector.extract_strided_slice %8 {offsets = [52, 0], sizes = [2, 128], strides = [1, 1]} : vector<128x128xbf16> to vector<2x128xbf16>
    %24 = vector.extract_strided_slice %8 {offsets = [54, 0], sizes = [2, 128], strides = [1, 1]} : vector<128x128xbf16> to vector<2x128xbf16>
    %25 = tpu.concatenate %9, %10, %11, %12, %13, %14, %15, %16, %17, %18, %19, %20, %21, %22, %23, %24 in 1 : vector<2x128xbf16>, vector<2x128xbf16>, vector<2x128xbf16>, vector<2x128xbf16>, vector<2x128xbf16>, vector<2x128xbf16>, vector<2x128xbf16>, vector<2x128xbf16>, vector<2x128xbf16>, vector<2x128xbf16>, vector<2x128xbf16>, vector<2x128xbf16>, vector<2x128xbf16>, vector<2x128xbf16>, vector<2x128xbf16>, vector<2x128xbf16> -> vector<2x2048xbf16>
    %26 = vector.extract_strided_slice %8 {offsets = [4, 0], sizes = [2, 128], strides = [1, 1]} : vector<128x128xbf16> to vector<2x128xbf16>
    %27 = vector.extract_strided_slice %8 {offsets = [6, 0], sizes = [2, 128], strides = [1, 1]} : vector<128x128xbf16> to vector<2x128xbf16>
    %28 = vector.extract_strided_slice %8 {offsets = [8, 0], sizes = [2, 128], strides = [1, 1]} : vector<128x128xbf16> to vector<2x128xbf16>
    %29 = vector.extract_strided_slice %8 {offsets = [10, 0], sizes = [2, 128], strides = [1, 1]} : vector<128x128xbf16> to vector<2x128xbf16>
    %30 = vector.extract_strided_slice %8 {offsets = [20, 0], sizes = [2, 128], strides = [1, 1]} : vector<128x128xbf16> to vector<2x128xbf16>
    %31 = vector.extract_strided_slice %8 {offsets = [22, 0], sizes = [2, 128], strides = [1, 1]} : vector<128x128xbf16> to vector<2x128xbf16>
    %32 = vector.extract_strided_slice %8 {offsets = [24, 0], sizes = [2, 128], strides = [1, 1]} : vector<128x128xbf16> to vector<2x128xbf16>
    %33 = vector.extract_strided_slice %8 {offsets = [26, 0], sizes = [2, 128], strides = [1, 1]} : vector<128x128xbf16> to vector<2x128xbf16>
    %34 = vector.extract_strided_slice %8 {offsets = [36, 0], sizes = [2, 128], strides = [1, 1]} : vector<128x128xbf16> to vector<2x128xbf16>
    %35 = vector.extract_strided_slice %8 {offsets = [38, 0], sizes = [2, 128], strides = [1, 1]} : vector<128x128xbf16> to vector<2x128xbf16>
    %36 = vector.extract_strided_slice %8 {offsets = [40, 0], sizes = [2, 128], strides = [1, 1]} : vector<128x128xbf16> to vector<2x128xbf16>
    %37 = vector.extract_strided_slice %8 {offsets = [42, 0], sizes = [2, 128], strides = [1, 1]} : vector<128x128xbf16> to vector<2x128xbf16>
    %38 = vector.extract_strided_slice %8 {offsets = [52, 0], sizes = [2, 128], strides = [1, 1]} : vector<128x128xbf16> to vector<2x128xbf16>
    %39 = vector.extract_strided_slice %8 {offsets = [54, 0], sizes = [2, 128], strides = [1, 1]} : vector<128x128xbf16> to vector<2x128xbf16>
    %40 = vector.extract_strided_slice %8 {offsets = [56, 0], sizes = [2, 128], strides = [1, 1]} : vector<128x128xbf16> to vector<2x128xbf16>
    %41 = vector.extract_strided_slice %8 {offsets = [58, 0], sizes = [2, 128], strides = [1, 1]} : vector<128x128xbf16> to vector<2x128xbf16>
    %42 = tpu.concatenate %26, %27, %28, %29, %30, %31, %32, %33, %34, %35, %36, %37, %38, %39, %40, %41 in 1 : vector<2x128xbf16>, vector<2x128xbf16>, vector<2x128xbf16>, vector<2x128xbf16>, vector<2x128xbf16>, vector<2x128xbf16>, vector<2x128xbf16>, vector<2x128xbf16>, vector<2x128xbf16>, vector<2x128xbf16>, vector<2x128xbf16>, vector<2x128xbf16>, vector<2x128xbf16>, vector<2x128xbf16>, vector<2x128xbf16>, vector<2x128xbf16> -> vector<2x2048xbf16>
    %43 = vector.extract_strided_slice %8 {offsets = [8, 0], sizes = [2, 128], strides = [1, 1]} : vector<128x128xbf16> to vector<2x128xbf16>
    %44 = vector.extract_strided_slice %8 {offsets = [10, 0], sizes = [2, 128], strides = [1, 1]} : vector<128x128xbf16> to vector<2x128xbf16>
    %45 = vector.extract_strided_slice %8 {offsets = [12, 0], sizes = [2, 128], strides = [1, 1]} : vector<128x128xbf16> to vector<2x128xbf16>
    %46 = vector.extract_strided_slice %8 {offsets = [14, 0], sizes = [2, 128], strides = [1, 1]} : vector<128x128xbf16> to vector<2x128xbf16>
    %47 = vector.extract_strided_slice %8 {offsets = [24, 0], sizes = [2, 128], strides = [1, 1]} : vector<128x128xbf16> to vector<2x128xbf16>
    %48 = vector.extract_strided_slice %8 {offsets = [26, 0], sizes = [2, 128], strides = [1, 1]} : vector<128x128xbf16> to vector<2x128xbf16>
    %49 = vector.extract_strided_slice %8 {offsets = [28, 0], sizes = [2, 128], strides = [1, 1]} : vector<128x128xbf16> to vector<2x128xbf16>
    %50 = vector.extract_strided_slice %8 {offsets = [30, 0], sizes = [2, 128], strides = [1, 1]} : vector<128x128xbf16> to vector<2x128xbf16>
    %51 = vector.extract_strided_slice %8 {offsets = [40, 0], sizes = [2, 128], strides = [1, 1]} : vector<128x128xbf16> to vector<2x128xbf16>
    %52 = vector.extract_strided_slice %8 {offsets = [42, 0], sizes = [2, 128], strides = [1, 1]} : vector<128x128xbf16> to vector<2x128xbf16>
    %53 = vector.extract_strided_slice %8 {offsets = [44, 0], sizes = [2, 128], strides = [1, 1]} : vector<128x128xbf16> to vector<2x128xbf16>
    %54 = vector.extract_strided_slice %8 {offsets = [46, 0], sizes = [2, 128], strides = [1, 1]} : vector<128x128xbf16> to vector<2x128xbf16>
    %55 = vector.extract_strided_slice %8 {offsets = [56, 0], sizes = [2, 128], strides = [1, 1]} : vector<128x128xbf16> to vector<2x128xbf16>
    %56 = vector.extract_strided_slice %8 {offsets = [58, 0], sizes = [2, 128], strides = [1, 1]} : vector<128x128xbf16> to vector<2x128xbf16>
    %57 = vector.extract_strided_slice %8 {offsets = [60, 0], sizes = [2, 128], strides = [1, 1]} : vector<128x128xbf16> to vector<2x128xbf16>
    %58 = vector.extract_strided_slice %8 {offsets = [62, 0], sizes = [2, 128], strides = [1, 1]} : vector<128x128xbf16> to vector<2x128xbf16>
    %59 = tpu.concatenate %43, %44, %45, %46, %47, %48, %49, %50, %51, %52, %53, %54, %55, %56, %57, %58 in 1 : vector<2x128xbf16>, vector<2x128xbf16>, vector<2x128xbf16>, vector<2x128xbf16>, vector<2x128xbf16>, vector<2x128xbf16>, vector<2x128xbf16>, vector<2x128xbf16>, vector<2x128xbf16>, vector<2x128xbf16>, vector<2x128xbf16>, vector<2x128xbf16>, vector<2x128xbf16>, vector<2x128xbf16>, vector<2x128xbf16>, vector<2x128xbf16> -> vector<2x2048xbf16>
    %60 = vector.extract_strided_slice %8 {offsets = [32, 0], sizes = [2, 128], strides = [1, 1]} : vector<128x128xbf16> to vector<2x128xbf16>
    %61 = vector.extract_strided_slice %8 {offsets = [34, 0], sizes = [2, 128], strides = [1, 1]} : vector<128x128xbf16> to vector<2x128xbf16>
    %62 = vector.extract_strided_slice %8 {offsets = [36, 0], sizes = [2, 128], strides = [1, 1]} : vector<128x128xbf16> to vector<2x128xbf16>
    %63 = vector.extract_strided_slice %8 {offsets = [38, 0], sizes = [2, 128], strides = [1, 1]} : vector<128x128xbf16> to vector<2x128xbf16>
    %64 = vector.extract_strided_slice %8 {offsets = [48, 0], sizes = [2, 128], strides = [1, 1]} : vector<128x128xbf16> to vector<2x128xbf16>
    %65 = vector.extract_strided_slice %8 {offsets = [50, 0], sizes = [2, 128], strides = [1, 1]} : vector<128x128xbf16> to vector<2x128xbf16>
    %66 = vector.extract_strided_slice %8 {offsets = [52, 0], sizes = [2, 128], strides = [1, 1]} : vector<128x128xbf16> to vector<2x128xbf16>
    %67 = vector.extract_strided_slice %8 {offsets = [54, 0], sizes = [2, 128], strides = [1, 1]} : vector<128x128xbf16> to vector<2x128xbf16>
    %68 = vector.extract_strided_slice %8 {offsets = [64, 0], sizes = [2, 128], strides = [1, 1]} : vector<128x128xbf16> to vector<2x128xbf16>
    %69 = vector.extract_strided_slice %8 {offsets = [66, 0], sizes = [2, 128], strides = [1, 1]} : vector<128x128xbf16> to vector<2x128xbf16>
    %70 = vector.extract_strided_slice %8 {offsets = [68, 0], sizes = [2, 128], strides = [1, 1]} : vector<128x128xbf16> to vector<2x128xbf16>
    %71 = vector.extract_strided_slice %8 {offsets = [70, 0], sizes = [2, 128], strides = [1, 1]} : vector<128x128xbf16> to vector<2x128xbf16>
    %72 = vector.extract_strided_slice %8 {offsets = [80, 0], sizes = [2, 128], strides = [1, 1]} : vector<128x128xbf16> to vector<2x128xbf16>
    %73 = vector.extract_strided_slice %8 {offsets = [82, 0], sizes = [2, 128], strides = [1, 1]} : vector<128x128xbf16> to vector<2x128xbf16>
    %74 = vector.extract_strided_slice %8 {offsets = [84, 0], sizes = [2, 128], strides = [1, 1]} : vector<128x128xbf16> to vector<2x128xbf16>
    %75 = vector.extract_strided_slice %8 {offsets = [86, 0], sizes = [2, 128], strides = [1, 1]} : vector<128x128xbf16> to vector<2x128xbf16>
    %76 = tpu.concatenate %60, %61, %62, %63, %64, %65, %66, %67, %68, %69, %70, %71, %72, %73, %74, %75 in 1 : vector<2x128xbf16>, vector<2x128xbf16>, vector<2x128xbf16>, vector<2x128xbf16>, vector<2x128xbf16>, vector<2x128xbf16>, vector<2x128xbf16>, vector<2x128xbf16>, vector<2x128xbf16>, vector<2x128xbf16>, vector<2x128xbf16>, vector<2x128xbf16>, vector<2x128xbf16>, vector<2x128xbf16>, vector<2x128xbf16>, vector<2x128xbf16> -> vector<2x2048xbf16>
    %77 = vector.extract_strided_slice %8 {offsets = [36, 0], sizes = [2, 128], strides = [1, 1]} : vector<128x128xbf16> to vector<2x128xbf16>
    %78 = vector.extract_strided_slice %8 {offsets = [38, 0], sizes = [2, 128], strides = [1, 1]} : vector<128x128xbf16> to vector<2x128xbf16>
    %79 = vector.extract_strided_slice %8 {offsets = [40, 0], sizes = [2, 128], strides = [1, 1]} : vector<128x128xbf16> to vector<2x128xbf16>
    %80 = vector.extract_strided_slice %8 {offsets = [42, 0], sizes = [2, 128], strides = [1, 1]} : vector<128x128xbf16> to vector<2x128xbf16>
    %81 = vector.extract_strided_slice %8 {offsets = [52, 0], sizes = [2, 128], strides = [1, 1]} : vector<128x128xbf16> to vector<2x128xbf16>
    %82 = vector.extract_strided_slice %8 {offsets = [54, 0], sizes = [2, 128], strides = [1, 1]} : vector<128x128xbf16> to vector<2x128xbf16>
    %83 = vector.extract_strided_slice %8 {offsets = [56, 0], sizes = [2, 128], strides = [1, 1]} : vector<128x128xbf16> to vector<2x128xbf16>
    %84 = vector.extract_strided_slice %8 {offsets = [58, 0], sizes = [2, 128], strides = [1, 1]} : vector<128x128xbf16> to vector<2x128xbf16>
    %85 = vector.extract_strided_slice %8 {offsets = [68, 0], sizes = [2, 128], strides = [1, 1]} : vector<128x128xbf16> to vector<2x128xbf16>
    %86 = vector.extract_strided_slice %8 {offsets = [70, 0], sizes = [2, 128], strides = [1, 1]} : vector<128x128xbf16> to vector<2x128xbf16>
    %87 = vector.extract_strided_slice %8 {offsets = [72, 0], sizes = [2, 128], strides = [1, 1]} : vector<128x128xbf16> to vector<2x128xbf16>
    %88 = vector.extract_strided_slice %8 {offsets = [74, 0], sizes = [2, 128], strides = [1, 1]} : vector<128x128xbf16> to vector<2x128xbf16>
    %89 = vector.extract_strided_slice %8 {offsets = [84, 0], sizes = [2, 128], strides = [1, 1]} : vector<128x128xbf16> to vector<2x128xbf16>
    %90 = vector.extract_strided_slice %8 {offsets = [86, 0], sizes = [2, 128], strides = [1, 1]} : vector<128x128xbf16> to vector<2x128xbf16>
    %91 = vector.extract_strided_slice %8 {offsets = [88, 0], sizes = [2, 128], strides = [1, 1]} : vector<128x128xbf16> to vector<2x128xbf16>
    %92 = vector.extract_strided_slice %8 {offsets = [90, 0], sizes = [2, 128], strides = [1, 1]} : vector<128x128xbf16> to vector<2x128xbf16>
    %93 = tpu.concatenate %77, %78, %79, %80, %81, %82, %83, %84, %85, %86, %87, %88, %89, %90, %91, %92 in 1 : vector<2x128xbf16>, vector<2x128xbf16>, vector<2x128xbf16>, vector<2x128xbf16>, vector<2x128xbf16>, vector<2x128xbf16>, vector<2x128xbf16>, vector<2x128xbf16>, vector<2x128xbf16>, vector<2x128xbf16>, vector<2x128xbf16>, vector<2x128xbf16>, vector<2x128xbf16>, vector<2x128xbf16>, vector<2x128xbf16>, vector<2x128xbf16> -> vector<2x2048xbf16>
    %94 = vector.extract_strided_slice %8 {offsets = [40, 0], sizes = [2, 128], strides = [1, 1]} : vector<128x128xbf16> to vector<2x128xbf16>
    %95 = vector.extract_strided_slice %8 {offsets = [42, 0], sizes = [2, 128], strides = [1, 1]} : vector<128x128xbf16> to vector<2x128xbf16>
    %96 = vector.extract_strided_slice %8 {offsets = [44, 0], sizes = [2, 128], strides = [1, 1]} : vector<128x128xbf16> to vector<2x128xbf16>
    %97 = vector.extract_strided_slice %8 {offsets = [46, 0], sizes = [2, 128], strides = [1, 1]} : vector<128x128xbf16> to vector<2x128xbf16>
    %98 = vector.extract_strided_slice %8 {offsets = [56, 0], sizes = [2, 128], strides = [1, 1]} : vector<128x128xbf16> to vector<2x128xbf16>
    %99 = vector.extract_strided_slice %8 {offsets = [58, 0], sizes = [2, 128], strides = [1, 1]} : vector<128x128xbf16> to vector<2x128xbf16>
    %100 = vector.extract_strided_slice %8 {offsets = [60, 0], sizes = [2, 128], strides = [1, 1]} : vector<128x128xbf16> to vector<2x128xbf16>
    %101 = vector.extract_strided_slice %8 {offsets = [62, 0], sizes = [2, 128], strides = [1, 1]} : vector<128x128xbf16> to vector<2x128xbf16>
    %102 = vector.extract_strided_slice %8 {offsets = [72, 0], sizes = [2, 128], strides = [1, 1]} : vector<128x128xbf16> to vector<2x128xbf16>
    %103 = vector.extract_strided_slice %8 {offsets = [74, 0], sizes = [2, 128], strides = [1, 1]} : vector<128x128xbf16> to vector<2x128xbf16>
    %104 = vector.extract_strided_slice %8 {offsets = [76, 0], sizes = [2, 128], strides = [1, 1]} : vector<128x128xbf16> to vector<2x128xbf16>
    %105 = vector.extract_strided_slice %8 {offsets = [78, 0], sizes = [2, 128], strides = [1, 1]} : vector<128x128xbf16> to vector<2x128xbf16>
    %106 = vector.extract_strided_slice %8 {offsets = [88, 0], sizes = [2, 128], strides = [1, 1]} : vector<128x128xbf16> to vector<2x128xbf16>
    %107 = vector.extract_strided_slice %8 {offsets = [90, 0], sizes = [2, 128], strides = [1, 1]} : vector<128x128xbf16> to vector<2x128xbf16>
    %108 = vector.extract_strided_slice %8 {offsets = [92, 0], sizes = [2, 128], strides = [1, 1]} : vector<128x128xbf16> to vector<2x128xbf16>
    %109 = vector.extract_strided_slice %8 {offsets = [94, 0], sizes = [2, 128], strides = [1, 1]} : vector<128x128xbf16> to vector<2x128xbf16>
    %110 = tpu.concatenate %94, %95, %96, %97, %98, %99, %100, %101, %102, %103, %104, %105, %106, %107, %108, %109 in 1 : vector<2x128xbf16>, vector<2x128xbf16>, vector<2x128xbf16>, vector<2x128xbf16>, vector<2x128xbf16>, vector<2x128xbf16>, vector<2x128xbf16>, vector<2x128xbf16>, vector<2x128xbf16>, vector<2x128xbf16>, vector<2x128xbf16>, vector<2x128xbf16>, vector<2x128xbf16>, vector<2x128xbf16>, vector<2x128xbf16>, vector<2x128xbf16> -> vector<2x2048xbf16>
    %111 = vector.extract_strided_slice %8 {offsets = [64, 0], sizes = [2, 128], strides = [1, 1]} : vector<128x128xbf16> to vector<2x128xbf16>
    %112 = vector.extract_strided_slice %8 {offsets = [66, 0], sizes = [2, 128], strides = [1, 1]} : vector<128x128xbf16> to vector<2x128xbf16>
    %113 = vector.extract_strided_slice %8 {offsets = [68, 0], sizes = [2, 128], strides = [1, 1]} : vector<128x128xbf16> to vector<2x128xbf16>
    %114 = vector.extract_strided_slice %8 {offsets = [70, 0], sizes = [2, 128], strides = [1, 1]} : vector<128x128xbf16> to vector<2x128xbf16>
    %115 = vector.extract_strided_slice %8 {offsets = [80, 0], sizes = [2, 128], strides = [1, 1]} : vector<128x128xbf16> to vector<2x128xbf16>
    %116 = vector.extract_strided_slice %8 {offsets = [82, 0], sizes = [2, 128], strides = [1, 1]} : vector<128x128xbf16> to vector<2x128xbf16>
    %117 = vector.extract_strided_slice %8 {offsets = [84, 0], sizes = [2, 128], strides = [1, 1]} : vector<128x128xbf16> to vector<2x128xbf16>
    %118 = vector.extract_strided_slice %8 {offsets = [86, 0], sizes = [2, 128], strides = [1, 1]} : vector<128x128xbf16> to vector<2x128xbf16>
    %119 = vector.extract_strided_slice %8 {offsets = [96, 0], sizes = [2, 128], strides = [1, 1]} : vector<128x128xbf16> to vector<2x128xbf16>
    %120 = vector.extract_strided_slice %8 {offsets = [98, 0], sizes = [2, 128], strides = [1, 1]} : vector<128x128xbf16> to vector<2x128xbf16>
    %121 = vector.extract_strided_slice %8 {offsets = [100, 0], sizes = [2, 128], strides = [1, 1]} : vector<128x128xbf16> to vector<2x128xbf16>
    %122 = vector.extract_strided_slice %8 {offsets = [102, 0], sizes = [2, 128], strides = [1, 1]} : vector<128x128xbf16> to vector<2x128xbf16>
    %123 = vector.extract_strided_slice %8 {offsets = [112, 0], sizes = [2, 128], strides = [1, 1]} : vector<128x128xbf16> to vector<2x128xbf16>
    %124 = vector.extract_strided_slice %8 {offsets = [114, 0], sizes = [2, 128], strides = [1, 1]} : vector<128x128xbf16> to vector<2x128xbf16>
    %125 = vector.extract_strided_slice %8 {offsets = [116, 0], sizes = [2, 128], strides = [1, 1]} : vector<128x128xbf16> to vector<2x128xbf16>
    %126 = vector.extract_strided_slice %8 {offsets = [118, 0], sizes = [2, 128], strides = [1, 1]} : vector<128x128xbf16> to vector<2x128xbf16>
    %127 = tpu.concatenate %111, %112, %113, %114, %115, %116, %117, %118, %119, %120, %121, %122, %123, %124, %125, %126 in 1 : vector<2x128xbf16>, vector<2x128xbf16>, vector<2x128xbf16>, vector<2x128xbf16>, vector<2x128xbf16>, vector<2x128xbf16>, vector<2x128xbf16>, vector<2x128xbf16>, vector<2x128xbf16>, vector<2x128xbf16>, vector<2x128xbf16>, vector<2x128xbf16>, vector<2x128xbf16>, vector<2x128xbf16>, vector<2x128xbf16>, vector<2x128xbf16> -> vector<2x2048xbf16>
    %128 = vector.extract_strided_slice %8 {offsets = [68, 0], sizes = [2, 128], strides = [1, 1]} : vector<128x128xbf16> to vector<2x128xbf16>
    %129 = vector.extract_strided_slice %8 {offsets = [70, 0], sizes = [2, 128], strides = [1, 1]} : vector<128x128xbf16> to vector<2x128xbf16>
    %130 = vector.extract_strided_slice %8 {offsets = [72, 0], sizes = [2, 128], strides = [1, 1]} : vector<128x128xbf16> to vector<2x128xbf16>
    %131 = vector.extract_strided_slice %8 {offsets = [74, 0], sizes = [2, 128], strides = [1, 1]} : vector<128x128xbf16> to vector<2x128xbf16>
    %132 = vector.extract_strided_slice %8 {offsets = [84, 0], sizes = [2, 128], strides = [1, 1]} : vector<128x128xbf16> to vector<2x128xbf16>
    %133 = vector.extract_strided_slice %8 {offsets = [86, 0], sizes = [2, 128], strides = [1, 1]} : vector<128x128xbf16> to vector<2x128xbf16>
    %134 = vector.extract_strided_slice %8 {offsets = [88, 0], sizes = [2, 128], strides = [1, 1]} : vector<128x128xbf16> to vector<2x128xbf16>
    %135 = vector.extract_strided_slice %8 {offsets = [90, 0], sizes = [2, 128], strides = [1, 1]} : vector<128x128xbf16> to vector<2x128xbf16>
    %136 = vector.extract_strided_slice %8 {offsets = [100, 0], sizes = [2, 128], strides = [1, 1]} : vector<128x128xbf16> to vector<2x128xbf16>
    %137 = vector.extract_strided_slice %8 {offsets = [102, 0], sizes = [2, 128], strides = [1, 1]} : vector<128x128xbf16> to vector<2x128xbf16>
    %138 = vector.extract_strided_slice %8 {offsets = [104, 0], sizes = [2, 128], strides = [1, 1]} : vector<128x128xbf16> to vector<2x128xbf16>
    %139 = vector.extract_strided_slice %8 {offsets = [106, 0], sizes = [2, 128], strides = [1, 1]} : vector<128x128xbf16> to vector<2x128xbf16>
    %140 = vector.extract_strided_slice %8 {offsets = [116, 0], sizes = [2, 128], strides = [1, 1]} : vector<128x128xbf16> to vector<2x128xbf16>
    %141 = vector.extract_strided_slice %8 {offsets = [118, 0], sizes = [2, 128], strides = [1, 1]} : vector<128x128xbf16> to vector<2x128xbf16>
    %142 = vector.extract_strided_slice %8 {offsets = [120, 0], sizes = [2, 128], strides = [1, 1]} : vector<128x128xbf16> to vector<2x128xbf16>
    %143 = vector.extract_strided_slice %8 {offsets = [122, 0], sizes = [2, 128], strides = [1, 1]} : vector<128x128xbf16> to vector<2x128xbf16>
    %144 = tpu.concatenate %128, %129, %130, %131, %132, %133, %134, %135, %136, %137, %138, %139, %140, %141, %142, %143 in 1 : vector<2x128xbf16>, vector<2x128xbf16>, vector<2x128xbf16>, vector<2x128xbf16>, vector<2x128xbf16>, vector<2x128xbf16>, vector<2x128xbf16>, vector<2x128xbf16>, vector<2x128xbf16>, vector<2x128xbf16>, vector<2x128xbf16>, vector<2x128xbf16>, vector<2x128xbf16>, vector<2x128xbf16>, vector<2x128xbf16>, vector<2x128xbf16> -> vector<2x2048xbf16>
    %145 = vector.extract_strided_slice %8 {offsets = [72, 0], sizes = [2, 128], strides = [1, 1]} : vector<128x128xbf16> to vector<2x128xbf16>
    %146 = vector.extract_strided_slice %8 {offsets = [74, 0], sizes = [2, 128], strides = [1, 1]} : vector<128x128xbf16> to vector<2x128xbf16>
    %147 = vector.extract_strided_slice %8 {offsets = [76, 0], sizes = [2, 128], strides = [1, 1]} : vector<128x128xbf16> to vector<2x128xbf16>
    %148 = vector.extract_strided_slice %8 {offsets = [78, 0], sizes = [2, 128], strides = [1, 1]} : vector<128x128xbf16> to vector<2x128xbf16>
    %149 = vector.extract_strided_slice %8 {offsets = [88, 0], sizes = [2, 128], strides = [1, 1]} : vector<128x128xbf16> to vector<2x128xbf16>
    %150 = vector.extract_strided_slice %8 {offsets = [90, 0], sizes = [2, 128], strides = [1, 1]} : vector<128x128xbf16> to vector<2x128xbf16>
    %151 = vector.extract_strided_slice %8 {offsets = [92, 0], sizes = [2, 128], strides = [1, 1]} : vector<128x128xbf16> to vector<2x128xbf16>
    %152 = vector.extract_strided_slice %8 {offsets = [94, 0], sizes = [2, 128], strides = [1, 1]} : vector<128x128xbf16> to vector<2x128xbf16>
    %153 = vector.extract_strided_slice %8 {offsets = [104, 0], sizes = [2, 128], strides = [1, 1]} : vector<128x128xbf16> to vector<2x128xbf16>
    %154 = vector.extract_strided_slice %8 {offsets = [106, 0], sizes = [2, 128], strides = [1, 1]} : vector<128x128xbf16> to vector<2x128xbf16>
    %155 = vector.extract_strided_slice %8 {offsets = [108, 0], sizes = [2, 128], strides = [1, 1]} : vector<128x128xbf16> to vector<2x128xbf16>
    %156 = vector.extract_strided_slice %8 {offsets = [110, 0], sizes = [2, 128], strides = [1, 1]} : vector<128x128xbf16> to vector<2x128xbf16>
    %157 = vector.extract_strided_slice %8 {offsets = [120, 0], sizes = [2, 128], strides = [1, 1]} : vector<128x128xbf16> to vector<2x128xbf16>
    %158 = vector.extract_strided_slice %8 {offsets = [122, 0], sizes = [2, 128], strides = [1, 1]} : vector<128x128xbf16> to vector<2x128xbf16>
    %159 = vector.extract_strided_slice %8 {offsets = [124, 0], sizes = [2, 128], strides = [1, 1]} : vector<128x128xbf16> to vector<2x128xbf16>
    %160 = vector.extract_strided_slice %8 {offsets = [126, 0], sizes = [2, 128], strides = [1, 1]} : vector<128x128xbf16> to vector<2x128xbf16>
    %161 = tpu.concatenate %145, %146, %147, %148, %149, %150, %151, %152, %153, %154, %155, %156, %157, %158, %159, %160 in 1 : vector<2x128xbf16>, vector<2x128xbf16>, vector<2x128xbf16>, vector<2x128xbf16>, vector<2x128xbf16>, vector<2x128xbf16>, vector<2x128xbf16>, vector<2x128xbf16>, vector<2x128xbf16>, vector<2x128xbf16>, vector<2x128xbf16>, vector<2x128xbf16>, vector<2x128xbf16>, vector<2x128xbf16>, vector<2x128xbf16>, vector<2x128xbf16> -> vector<2x2048xbf16>
    %162 = tpu.concatenate %25, %42, %59, %76, %93, %110, %127, %144, %161 in 0 : vector<2x2048xbf16>, vector<2x2048xbf16>, vector<2x2048xbf16>, vector<2x2048xbf16>, vector<2x2048xbf16>, vector<2x2048xbf16>, vector<2x2048xbf16>, vector<2x2048xbf16>, vector<2x2048xbf16> -> vector<18x2048xbf16>
    %c0_6 = arith.constant 0 : index
    %c0_7 = arith.constant 0 : index
    %163 = vector.load %arg4[%c0_6, %c0_7] : memref<2048x128xbf16, #tpu.memory_space<vmem>>, vector<2048x128xbf16>
    %cst_8 = arith.constant dense<0.000000e+00> : vector<18x128xf32>
    %164 = tpu.matmul %162, %163, %cst_8 {dimension_numbers = #tpu.dot_dimension_numbers<[1], [0], [0], [1], [0, 0, 1, 1], [], []>} : vector<18x2048xbf16>, vector<2048x128xbf16>, vector<18x128xf32> -> vector<18x128xf32>
    %c0_9 = arith.constant 0 : index
    %c0_10 = arith.constant 0 : index
    %165 = vector.load %arg5[%c0_9, %c0_10] : memref<1x128xf32, #tpu.memory_space<vmem>>, vector<1x128xf32>
    %166 = vector.broadcast %165 : vector<1x128xf32> to vector<18x128xf32>
    %167 = arith.addf %164, %166 : vector<18x128xf32>
    %cst_11 = arith.constant 0.000000e+00 : f32
    %168 = vector.broadcast %cst_11 : f32 to vector<18x128xf32>
    %169 = arith.maximumf %167, %168 : vector<18x128xf32>
    %170 = arith.truncf %169 : vector<18x128xf32> to vector<18x128xbf16>
    %171 = vector.extract_strided_slice %170 {offsets = [0, 0], sizes = [2, 128], strides = [1, 1]} : vector<18x128xbf16> to vector<2x128xbf16>
    %172 = vector.extract_strided_slice %170 {offsets = [2, 0], sizes = [2, 128], strides = [1, 1]} : vector<18x128xbf16> to vector<2x128xbf16>
    %173 = vector.extract_strided_slice %170 {offsets = [4, 0], sizes = [2, 128], strides = [1, 1]} : vector<18x128xbf16> to vector<2x128xbf16>
    %174 = vector.extract_strided_slice %170 {offsets = [6, 0], sizes = [2, 128], strides = [1, 1]} : vector<18x128xbf16> to vector<2x128xbf16>
    %175 = vector.extract_strided_slice %170 {offsets = [8, 0], sizes = [2, 128], strides = [1, 1]} : vector<18x128xbf16> to vector<2x128xbf16>
    %176 = vector.extract_strided_slice %170 {offsets = [10, 0], sizes = [2, 128], strides = [1, 1]} : vector<18x128xbf16> to vector<2x128xbf16>
    %177 = vector.extract_strided_slice %170 {offsets = [12, 0], sizes = [2, 128], strides = [1, 1]} : vector<18x128xbf16> to vector<2x128xbf16>
    %178 = vector.extract_strided_slice %170 {offsets = [14, 0], sizes = [2, 128], strides = [1, 1]} : vector<18x128xbf16> to vector<2x128xbf16>
    %179 = vector.extract_strided_slice %170 {offsets = [16, 0], sizes = [2, 128], strides = [1, 1]} : vector<18x128xbf16> to vector<2x128xbf16>
    %180 = tpu.concatenate %171, %172, %173, %174, %175, %176, %177, %178, %179 in 1 : vector<2x128xbf16>, vector<2x128xbf16>, vector<2x128xbf16>, vector<2x128xbf16>, vector<2x128xbf16>, vector<2x128xbf16>, vector<2x128xbf16>, vector<2x128xbf16>, vector<2x128xbf16> -> vector<2x1152xbf16>
    %c0_12 = arith.constant 0 : index
    %c0_13 = arith.constant 0 : index
    %181 = vector.load %arg6[%c0_12, %c0_13] : memref<1152x128xbf16, #tpu.memory_space<vmem>>, vector<1152x128xbf16>
    %cst_14 = arith.constant dense<0.000000e+00> : vector<2x128xf32>
    %182 = tpu.matmul %180, %181, %cst_14 {dimension_numbers = #tpu.dot_dimension_numbers<[1], [0], [0], [1], [0, 0, 1, 1], [], []>} : vector<2x1152xbf16>, vector<1152x128xbf16>, vector<2x128xf32> -> vector<2x128xf32>
    %c0_15 = arith.constant 0 : index
    %c0_16 = arith.constant 0 : index
    %183 = vector.load %arg7[%c0_15, %c0_16] : memref<1x128xf32, #tpu.memory_space<vmem>>, vector<1x128xf32>
    %184 = vector.broadcast %183 : vector<1x128xf32> to vector<2x128xf32>
    %185 = arith.addf %182, %184 : vector<2x128xf32>
    %cst_17 = arith.constant 0.000000e+00 : f32
    %186 = vector.broadcast %cst_17 : f32 to vector<2x128xf32>
    %187 = arith.maximumf %185, %186 : vector<2x128xf32>
    %188 = arith.truncf %187 : vector<2x128xf32> to vector<2x128xbf16>
    %c0_18 = arith.constant 0 : index
    %c0_19 = arith.constant 0 : index
    %189 = vector.load %arg8[%c0_18, %c0_19] : memref<128x512xbf16, #tpu.memory_space<vmem>>, vector<128x512xbf16>
    %cst_20 = arith.constant dense<0.000000e+00> : vector<2x512xf32>
    %190 = tpu.matmul %188, %189, %cst_20 {dimension_numbers = #tpu.dot_dimension_numbers<[1], [0], [0], [1], [0, 0, 1, 1], [], []>} : vector<2x128xbf16>, vector<128x512xbf16>, vector<2x512xf32> -> vector<2x512xf32>
    %c0_21 = arith.constant 0 : index
    %c0_22 = arith.constant 0 : index
    %191 = vector.load %arg9[%c0_21, %c0_22] : memref<1x512xf32, #tpu.memory_space<vmem>>, vector<1x512xf32>
    %192 = vector.broadcast %191 : vector<1x512xf32> to vector<2x512xf32>
    %193 = arith.addf %190, %192 : vector<2x512xf32>
    %cst_23 = arith.constant 0.000000e+00 : f32
    %194 = vector.broadcast %cst_23 : f32 to vector<2x512xf32>
    %195 = arith.maximumf %193, %194 : vector<2x512xf32>
    %c0_24 = arith.constant 0 : index
    %c0_25 = arith.constant 0 : index
    %196 = vector.load %arg10[%c0_24, %c0_25] : memref<512x128xbf16, #tpu.memory_space<vmem>>, vector<512x128xbf16>
    %197 = arith.truncf %195 : vector<2x512xf32> to vector<2x512xbf16>
    %cst_26 = arith.constant dense<0.000000e+00> : vector<2x128xf32>
    %198 = tpu.matmul %197, %196, %cst_26 {dimension_numbers = #tpu.dot_dimension_numbers<[1], [0], [0], [1], [0, 0, 1, 1], [], []>} : vector<2x512xbf16>, vector<512x128xbf16>, vector<2x128xf32> -> vector<2x128xf32>
    %c0_27 = arith.constant 0 : index
    %c0_28 = arith.constant 0 : index
    %199 = vector.load %arg11[%c0_27, %c0_28] : memref<1x128xf32, #tpu.memory_space<vmem>>, vector<1x128xf32>
    %200 = vector.broadcast %199 : vector<1x128xf32> to vector<2x128xf32>
    %201 = arith.addf %198, %200 : vector<2x128xf32>
    %c0_29 = arith.constant 0 : index
    %c0_30 = arith.constant 0 : index
    %202 = vector.load %arg12[%c0_29, %c0_30] : memref<2x128xf32, #tpu.memory_space<vmem>>, vector<2x128xf32>
    tpu.vector_store %arg12[%c0_29, %c0_30], %201 {strides = array<i32>} : memref<2x128xf32, #tpu.memory_space<vmem>>, vector<2x128xf32>,
    return
  }
  func.func @transform_0(%arg0: i32) -> (i32, i32) {
    %c0_i32 = arith.constant 0 : i32
    %c0_i32_0 = arith.constant 0 : i32
    %c0_i32_1 = arith.constant 0 : i32
    return %c0_i32, %c0_i32_0 : i32, i32
  }
  func.func @transform_1(%arg0: i32) -> (i32, i32) {
    %c0_i32 = arith.constant 0 : i32
    %c0_i32_0 = arith.constant 0 : i32
    %c0_i32_1 = arith.constant 0 : i32
    return %c0_i32, %c0_i32_0 : i32, i32
  }
  func.func @transform_2(%arg0: i32) -> (i32, i32) {
    %c0_i32 = arith.constant 0 : i32
    %c0_i32_0 = arith.constant 0 : i32
    %c0_i32_1 = arith.constant 0 : i32
    return %c0_i32, %c0_i32_0 : i32, i32
  }
  func.func @transform_3(%arg0: i32) -> (i32, i32) {
    %c0_i32 = arith.constant 0 : i32
    %c0_i32_0 = arith.constant 0 : i32
    %c0_i32_1 = arith.constant 0 : i32
    return %c0_i32, %c0_i32_0 : i32, i32
  }
  func.func @transform_4(%arg0: i32) -> (i32, i32) {
    %c0_i32 = arith.constant 0 : i32
    %c0_i32_0 = arith.constant 0 : i32
    %c0_i32_1 = arith.constant 0 : i32
    return %c0_i32, %c0_i32_0 : i32, i32
  }
  func.func @transform_5(%arg0: i32) -> (i32, i32) {
    %c0_i32 = arith.constant 0 : i32
    %c0_i32_0 = arith.constant 0 : i32
    %c0_i32_1 = arith.constant 0 : i32
    return %c0_i32, %c0_i32_0 : i32, i32
  }
  func.func @transform_6(%arg0: i32) -> (i32, i32) {
    %c0_i32 = arith.constant 0 : i32
    %c0_i32_0 = arith.constant 0 : i32
    %c0_i32_1 = arith.constant 0 : i32
    return %c0_i32, %c0_i32_0 : i32, i32
  }
  func.func @transform_7(%arg0: i32) -> (i32, i32) {
    %c0_i32 = arith.constant 0 : i32
    %c0_i32_0 = arith.constant 0 : i32
    %c0_i32_1 = arith.constant 0 : i32
    return %c0_i32, %c0_i32_0 : i32, i32
  }
  func.func @transform_8(%arg0: i32) -> (i32, i32) {
    %c0_i32 = arith.constant 0 : i32
    %c0_i32_0 = arith.constant 0 : i32
    %c0_i32_1 = arith.constant 0 : i32
    return %c0_i32, %c0_i32_0 : i32, i32
  }
  func.func @transform_9(%arg0: i32) -> (i32, i32) {
    %c0_i32 = arith.constant 0 : i32
    %c0_i32_0 = arith.constant 0 : i32
    %c0_i32_1 = arith.constant 0 : i32
    return %c0_i32, %c0_i32_0 : i32, i32
  }
  func.func @transform_10(%arg0: i32) -> (i32, i32) {
    %c0_i32 = arith.constant 0 : i32
    %c0_i32_0 = arith.constant 0 : i32
    %c0_i32_1 = arith.constant 0 : i32
    return %c0_i32, %c0_i32_0 : i32, i32
  }
  func.func @transform_11(%arg0: i32) -> (i32, i32) {
    %c0_i32 = arith.constant 0 : i32
    %c0_i32_0 = arith.constant 0 : i32
    %c0_i32_1 = arith.constant 0 : i32
    return %c0_i32, %c0_i32_0 : i32, i32
  }
}

</mosaic_0001>

<bundles_post_ra>
// kernel: qr_dqn_forward.1
= control target key start
LH: loop header
LB: loop body
LE: loop exit
PB: predicated region body
PF: predicated region fallthrough
CT: control target
= control target key end

     0   :  { %16 = vsyncpa [#allocation3], 0  ;;  %s5855_s0 = inlined_call_operand.hbm [shape: bf16[128,256], index: 0, kind: input, shape index: {}]   ;;  %s5856_s1 = inlined_call_operand.hbm [shape: bf16[256,128], index: 1, kind: input, shape index: {}]   ;;  %s5857_s2 = inlined_call_operand.hbm [shape: f32[1,128], index: 2, kind: input, shape index: {}]   ;;  %s5858_s3 = inlined_call_operand.hbm [shape: bf16[2048,128], index: 3, kind: input, shape index: {}]   ;;  %s5859_s4 = inlined_call_operand.hbm [shape: f32[1,128], index: 4, kind: input, shape index: {}]   ;;  %s5860_s5 = inlined_call_operand.hbm [shape: bf16[1152,128], index: 5, kind: input, shape index: {}]   ;;  %s5861_s6 = inlined_call_operand.hbm [shape: f32[1,128], index: 6, kind: input, shape index: {}]   ;;  %s5862_s7 = inlined_call_operand.hbm [shape: bf16[128,512], index: 7, kind: input, shape index: {}]   ;;  %s5863_s8 = inlined_call_operand.hbm [shape: f32[1,512], index: 8, kind: input, shape index: {}]   ;;  %s5864_s9 = inlined_call_operand.hbm [shape: bf16[512,128], index: 9, kind: input, shape index: {}]   ;;  %s5865_s10 = inlined_call_operand.hbm [shape: f32[1,128], index: 10, kind: input, shape index: {}]   ;;  %s5866_s11 = inlined_call_operand.hbm [shape: f32[2,128], index: 11, kind: output, shape index: {}]  }
   0x1   :  { %17 = vsyncpa [#allocation6], 0 }
   0x2   :  { %18 = vsyncpa [#allocation9], 0 }
   0x3   :  { %19 = vsyncpa [#allocation12], 0 }
   0x4   :  { %20 = vsyncpa [#allocation15], 0 }
   0x5   :  { %21 = vsyncpa [#allocation18], 0 }
   0x6   :  { %22 = vsyncpa [#allocation4], 0  ;;  %s5202_s17 = smov [#allocation5]   ;;  %s4924_s21 = scalar_lea.hbm %s5856_s1, 2048 }
   0x7   :  { %s40_s18 = sshll.u32 %s5202_s17, 4  ;;  %p4925_p0 = scmp.ne.s32.totalorder %s5856_s1, %s4924_s21  ;;  %s41_s18 = int_to_ptr.vmem [resolvable:$true] %s40_s18 }
   0x8   :  { %p4928_p1 = scmp.lt.u32.totalorder %s4924_s21, %s5856_s1 }
   0xa   :  { %p4930_p2 = pnand %p4928_p1, %p4925_p0 }
   0xc   :  { %4933 = shalt.err (!%p4930_p2)
}
   0xd   :  { %s4934_s26 = scalar_lea.vmem %s41_s18, 2048  ;;  %p4939_p4 = scmp.lt.s32.totalorder %s41_s18, %s41_s18 }
   0xe   :  { %p4935_p3 = scmp.ne.s32.totalorder %s41_s18, %s4934_s26  ;;  %p4940_p5 = scmp.lt.s32.totalorder %s4934_s26, %s4934_s26 }
  0x10   :  { %p4941_p6 = por %p4940_p5, %p4939_p4 }
  0x12   :  { %p4942_p7 = pnand %p4941_p6, %p4935_p3 }
  0x14   :  { %4945 = shalt.err (!%p4942_p7)
}
  0x15   :  { %s5203_s27 = smov 64   ;;  %s5204_s28 = smov 4  }
  0x16   :  { %46 = dma.hbm_to_vmem [thread:$0]  %s5856_s1, 2048, %s41_s18, [#allocation6], %s5203_s27, %s5203_s27, %s5204_s28  }
  0x17   :  { %s5205_s12 = smov [#allocation8]   ;;  %s5206_s14 = smov [#allocation11]  }
  0x18   :  { %s62_s13 = sshll.u32 %s5205_s12, 4  ;;  %s84_s15 = sshll.u32 %s5206_s14, 4  ;;  %s63_s13 = int_to_ptr.vmem [resolvable:$true] %s62_s13  ;;  %s85_s15 = int_to_ptr.vmem [resolvable:$true] %s84_s15 }
  0x19   :  { %s4946_s19 = scalar_lea.hbm %s5858_s3, 16384 }
  0x1a   :  { %p4947_p8 = scmp.ne.s32.totalorder %s5858_s3, %s4946_s19  ;;  %p4950_p9 = scmp.lt.u32.totalorder %s4946_s19, %s5858_s3 }
  0x1c   :  { %p4952_p10 = pnand %p4950_p9, %p4947_p8 }
  0x1e   :  { %4955 = shalt.err (!%p4952_p10)
}
  0x1f   :  { %s4956_s1 = scalar_lea.vmem %s63_s13, 16384  ;;  %p4961_p12 = scmp.lt.s32.totalorder %s63_s13, %s63_s13 }
  0x20   :  { %p4957_p11 = scmp.ne.s32.totalorder %s63_s13, %s4956_s1  ;;  %p4962_p13 = scmp.lt.s32.totalorder %s4956_s1, %s4956_s1 }
  0x22   :  { %p4963_p0 = por %p4962_p13, %p4961_p12 }
  0x24   :  { %p4964_p1 = pnand %p4963_p0, %p4957_p11 }
  0x26   :  { %4967 = shalt.err (!%p4964_p1)
}
  0x27   :  { %68 = dma.hbm_to_vmem [thread:$0]  %s5858_s3, 16384, %s63_s13, [#allocation9], %s5203_s27, %s5203_s27, %s5204_s28  }
  0x28   :  { %s4968_s29 = scalar_lea.hbm %s5860_s5, 9216 }
  0x29   :  { %p4969_p2 = scmp.ne.s32.totalorder %s5860_s5, %s4968_s29  ;;  %p4972_p3 = scmp.lt.u32.totalorder %s4968_s29, %s5860_s5 }
  0x2b   :  { %p4974_p4 = pnand %p4972_p3, %p4969_p2 }
  0x2d   :  { %4977 = shalt.err (!%p4974_p4)
}
  0x2e   :  { %s4978_s17 = scalar_lea.vmem %s85_s15, 9216  ;;  %p4983_p6 = scmp.lt.s32.totalorder %s85_s15, %s85_s15 }
  0x2f   :  { %p4979_p5 = scmp.ne.s32.totalorder %s85_s15, %s4978_s17  ;;  %p4984_p7 = scmp.lt.s32.totalorder %s4978_s17, %s4978_s17 }
  0x31   :  { %p4985_p8 = por %p4984_p7, %p4983_p6 }
  0x33   :  { %p4986_p9 = pnand %p4985_p8, %p4979_p5 }
  0x35   :  { %4989 = shalt.err (!%p4986_p9)
}
  0x36   :  { %90 = dma.hbm_to_vmem [thread:$0]  %s5860_s5, 9216, %s85_s15, [#allocation12], %s5203_s27, %s5203_s27, %s5204_s28  }
  0x37   :  { %s5207_s19 = smov [#allocation14]   ;;  %s4990_s23 = scalar_lea.hbm %s5862_s7, 4096 }
  0x38   :  { %s106_s20 = sshll.u32 %s5207_s19, 4  ;;  %p4991_p10 = scmp.ne.s32.totalorder %s5862_s7, %s4990_s23  ;;  %s107_s20 = int_to_ptr.vmem [resolvable:$true] %s106_s20 }
  0x39   :  { %p4994_p11 = scmp.lt.u32.totalorder %s4990_s23, %s5862_s7 }
  0x3b   :  { %p4996_p12 = pnand %p4994_p11, %p4991_p10 }
  0x3d   :  { %4999 = shalt.err (!%p4996_p12)
}
  0x3e   :  { %s5000_s26 = scalar_lea.vmem %s107_s20, 4096  ;;  %p5005_p0 = scmp.lt.s32.totalorder %s107_s20, %s107_s20 }
  0x3f   :  { %p5001_p13 = scmp.ne.s32.totalorder %s107_s20, %s5000_s26  ;;  %p5006_p1 = scmp.lt.s32.totalorder %s5000_s26, %s5000_s26 }
  0x41   :  { %p5007_p2 = por %p5006_p1, %p5005_p0 }
  0x43   :  { %p5008_p3 = pnand %p5007_p2, %p5001_p13 }
  0x45   :  { %5011 = shalt.err (!%p5008_p3)
}
  0x46   :  { %s5208_s5 = smov 256   ;;  %s5209_s15 = smov 16  }
  0x47   :  { %112 = dma.hbm_to_vmem [thread:$0]  %s5862_s7, 4096, %s107_s20, [#allocation15], %s5208_s5, %s5208_s5, %s5209_s15  }
  0x48   :  { %s5210_s12 = smov [#allocation17]   ;;  %s5211_s16 = smov [#allocation2]  }
  0x49   :  { %s128_s14 = sshll.u32 %s5210_s12, 4  ;;  %s28_s17 = sshll.u32 %s5211_s16, 4  ;;  %s129_s14 = int_to_ptr.vmem [resolvable:$true] %s128_s14  ;;  %s5340_s17 = int_to_ptr.vmem [resolvable:$true] %s28_s17 }
  0x4a   :  { %s5012_s19 = scalar_lea.hbm %s5864_s9, 4096 }
  0x4b   :  { %p5013_p4 = scmp.ne.s32.totalorder %s5864_s9, %s5012_s19  ;;  %p5016_p5 = scmp.lt.u32.totalorder %s5012_s19, %s5864_s9 }
  0x4d   :  { %p5018_p6 = pnand %p5016_p5, %p5013_p4 }
  0x4f   :  { %5021 = shalt.err (!%p5018_p6)
}
  0x50   :  { %s5022_s7 = scalar_lea.vmem %s129_s14, 4096  ;;  %p5027_p8 = scmp.lt.s32.totalorder %s129_s14, %s129_s14 }
  0x51   :  { %p5023_p7 = scmp.ne.s32.totalorder %s129_s14, %s5022_s7  ;;  %p5028_p9 = scmp.lt.s32.totalorder %s5022_s7, %s5022_s7 }
  0x53   :  { %p5029_p10 = por %p5028_p9, %p5027_p8 }
  0x55   :  { %p5030_p11 = pnand %p5029_p10, %p5023_p7 }
  0x57   :  { %5033 = shalt.err (!%p5030_p11)
}
  0x58   :  { %134 = dma.hbm_to_vmem [thread:$0]  %s5864_s9, 4096, %s129_s14, [#allocation18], %s5203_s27, %s5203_s27, %s5204_s28  }
  0x59   :  { %s5034_s26 = scalar_lea.hbm %s5855_s0, 2048 }
  0x5a   :  { %p5035_p12 = scmp.ne.s32.totalorder %s5855_s0, %s5034_s26  ;;  %p5038_p13 = scmp.lt.u32.totalorder %s5034_s26, %s5855_s0 }
  0x5c   :  { %p5040_p0 = pnand %p5038_p13, %p5035_p12 }
  0x5e   :  { %5043 = shalt.err (!%p5040_p0)
}
  0x5f   :  { %s5044_s12 = scalar_lea.vmem %s5340_s17, 2048  ;;  %p5049_p2 = scmp.lt.s32.totalorder %s5340_s17, %s5340_s17 }
  0x60   :  { %p5045_p1 = scmp.ne.s32.totalorder %s5340_s17, %s5044_s12  ;;  %p5050_p3 = scmp.lt.s32.totalorder %s5044_s12, %s5044_s12 }
  0x62   :  { %p5051_p4 = por %p5050_p3, %p5049_p2 }
  0x64   :  { %p5052_p5 = pnand %p5051_p4, %p5045_p1 }
  0x66   :  { %5055 = shalt.err (!%p5052_p5)
}
  0x67   :  { %s5212_s9 = smov 128   ;;  %s5213_s27 = smov 8  }
  0x68   :  { %34 = dma.hbm_to_vmem [thread:$0]  %s5855_s0, 2048, %s5340_s17, [#allocation3], %s5212_s9, %s5212_s9, %s5213_s27  }
  0x69   :  { %s5214_s16 = smov [#allocation7]   ;;  %s5215_s13 = smov [#allocation10]  }
  0x6a   :  { %s53_s3 = sshll.u32 %s5214_s16, 4  ;;  %s75_s19 = sshll.u32 %s5215_s13, 4  ;;  %s54_s3 = int_to_ptr.vmem [resolvable:$true] %s53_s3  ;;  %s76_s19 = int_to_ptr.vmem [resolvable:$true] %s75_s19 }
  0x6b   :  { %s5056_s23 = scalar_lea.hbm %s5857_s2, 16 }
  0x6c   :  { %p5057_p6 = scmp.ne.s32.totalorder %s5857_s2, %s5056_s23  ;;  %p5060_p7 = scmp.lt.u32.totalorder %s5056_s23, %s5857_s2 }
  0x6e   :  { %p5062_p8 = pnand %p5060_p7, %p5057_p6 }
  0x70   :  { %5065 = shalt.err (!%p5062_p8)
}
  0x71   :  { %s5066_s0 = scalar_lea.vmem %s54_s3, 16  ;;  %s5070_s17 = scalar_lea.vmem %s54_s3, 32 }
  0x72   :  { %p5067_p9 = scmp.ne.s32.totalorder %s54_s3, %s5066_s0  ;;  %p5071_p10 = scmp.lt.s32.totalorder %s54_s3, %s54_s3 }
  0x73   :  { %p5072_p11 = scmp.lt.s32.totalorder %s5070_s17, %s5066_s0 }
  0x75   :  { %p5073_p12 = por %p5072_p11, %p5071_p10 }
  0x77   :  { %p5074_p13 = pnand %p5073_p12, %p5067_p9 }
  0x79   :  { %5077 = shalt.err (!%p5074_p13)
}
  0x7a   :  { %56 = dma.hbm_to_vmem [thread:$0]  %s5857_s2, 16, %s54_s3, [#allocation6]  }
  0x7b   :  { %s5078_s15 = scalar_lea.hbm %s5859_s4, 16 }
  0x7c   :  { %p5079_p0 = scmp.ne.s32.totalorder %s5859_s4, %s5078_s15  ;;  %p5082_p1 = scmp.lt.u32.totalorder %s5078_s15, %s5859_s4 }
  0x7e   :  { %p5084_p2 = pnand %p5082_p1, %p5079_p0 }
  0x80   :  { %5087 = shalt.err (!%p5084_p2)
}
  0x81   :  { %s5088_s27 = scalar_lea.vmem %s76_s19, 16  ;;  %s5092_s28 = scalar_lea.vmem %s76_s19, 32 }
  0x82   :  { %p5089_p3 = scmp.ne.s32.totalorder %s76_s19, %s5088_s27  ;;  %p5093_p4 = scmp.lt.s32.totalorder %s76_s19, %s76_s19 }
  0x83   :  { %p5094_p5 = scmp.lt.s32.totalorder %s5092_s28, %s5088_s27 }
  0x85   :  { %p5095_p6 = por %p5094_p5, %p5093_p4 }
  0x87   :  { %p5096_p7 = pnand %p5095_p6, %p5089_p3 }
  0x89   :  { %5099 = shalt.err (!%p5096_p7)
}
  0x8a   :  { %78 = dma.hbm_to_vmem [thread:$0]  %s5859_s4, 16, %s76_s19, [#allocation9]  }
  0x8b   :  { %s5216_s16 = smov [#allocation13]   ;;  %s5217_s13 = smov [#allocation16]  }
  0x8c   :  { %s97_s3 = sshll.u32 %s5216_s16, 4  ;;  %s119_s21 = sshll.u32 %s5217_s13, 4  ;;  %s98_s3 = int_to_ptr.vmem [resolvable:$true] %s97_s3  ;;  %s120_s21 = int_to_ptr.vmem [resolvable:$true] %s119_s21 }
  0x8d   :  { %s5100_s1 = scalar_lea.hbm %s5861_s6, 16 }
  0x8e   :  { %p5101_p8 = scmp.ne.s32.totalorder %s5861_s6, %s5100_s1  ;;  %p5104_p9 = scmp.lt.u32.totalorder %s5100_s1, %s5861_s6 }
  0x90   :  { %p5106_p10 = pnand %p5104_p9, %p5101_p8 }
  0x92   :  { %5109 = shalt.err (!%p5106_p10)
}
  0x93   :  { %s5110_s4 = scalar_lea.vmem %s98_s3, 16  ;;  %s5114_s19 = scalar_lea.vmem %s98_s3, 32 }
  0x94   :  { %p5111_p11 = scmp.ne.s32.totalorder %s98_s3, %s5110_s4  ;;  %p5115_p12 = scmp.lt.s32.totalorder %s98_s3, %s98_s3 }
  0x95   :  { %p5116_p13 = scmp.lt.s32.totalorder %s5114_s19, %s5110_s4 }
  0x97   :  { %p5117_p0 = por %p5116_p13, %p5115_p12 }
  0x99   :  { %p5118_p1 = pnand %p5117_p0, %p5111_p11 }
  0x9b   :  { %5121 = shalt.err (!%p5118_p1)
}
  0x9c   :  { %100 = dma.hbm_to_vmem [thread:$0]  %s5861_s6, 16, %s98_s3, [#allocation12]  }
  0x9d   :  { %s5122_s5 = scalar_lea.hbm %s5863_s8, 64 }
  0x9e   :  { %p5123_p2 = scmp.ne.s32.totalorder %s5863_s8, %s5122_s5  ;;  %p5126_p3 = scmp.lt.u32.totalorder %s5122_s5, %s5863_s8 }
  0xa0   :  { %p5128_p4 = pnand %p5126_p3, %p5123_p2 }
  0xa2   :  { %5131 = shalt.err (!%p5128_p4)
}
  0xa3   :  { %s5132_s9 = scalar_lea.vmem %s120_s21, 64  ;;  %p5137_p6 = scmp.lt.s32.totalorder %s120_s21, %s120_s21 }
  0xa4   :  { %p5133_p5 = scmp.ne.s32.totalorder %s120_s21, %s5132_s9  ;;  %p5138_p7 = scmp.lt.s32.totalorder %s5132_s9, %s5132_s9 }
  0xa6   :  { %p5139_p8 = por %p5138_p7, %p5137_p6 }
  0xa8   :  { %p5140_p9 = pnand %p5139_p8, %p5133_p5 }
  0xaa   :  { %5143 = shalt.err (!%p5140_p9)
}
  0xab   :  { %122 = dma.hbm_to_vmem [thread:$0]  %s5863_s8, 64, %s120_s21, [#allocation15]  }
  0xac   :  { %s5218_s28 = smov [#allocation19]   ;;  %s5144_s3 = scalar_lea.hbm %s5865_s10, 16 }
  0xad   :  { %s141_s2 = sshll.u32 %s5218_s28, 4  ;;  %p5145_p10 = scmp.ne.s32.totalorder %s5865_s10, %s5144_s3  ;;  %s142_s2 = int_to_ptr.vmem [resolvable:$true] %s141_s2 }
  0xae   :  { %p5148_p11 = scmp.lt.u32.totalorder %s5144_s3, %s5865_s10 }
  0xb0   :  { %p5150_p12 = pnand %p5148_p11, %p5145_p10 }
  0xb2   :  { %5153 = shalt.err (!%p5150_p12)
}
  0xb3   :  { %s5154_s7 = scalar_lea.vmem %s142_s2, 16  ;;  %s5158_s8 = scalar_lea.vmem %s142_s2, 32 }
  0xb4   :  { %p5155_p13 = scmp.ne.s32.totalorder %s142_s2, %s5154_s7  ;;  %p5159_p0 = scmp.lt.s32.totalorder %s142_s2, %s142_s2 }
  0xb5   :  { %p5160_p1 = scmp.lt.s32.totalorder %s5158_s8, %s5154_s7 }
  0xb7   :  { %p5161_p2 = por %p5160_p1, %p5159_p0 }
  0xb9   :  { %p5162_p3 = pnand %p5161_p2, %p5155_p13 }
  0xbb   :  { %5165 = shalt.err (!%p5162_p3)
}
  0xbc   :  { %144 = dma.hbm_to_vmem [thread:$0]  %s5865_s10, 16, %s142_s2, [#allocation18]  }
  0xbd   :  { %5188 = dma.done.wait [#allocation3], 2048  }
  0xbe   :  { %5189 = vsyncadd [#allocation3], 4294965248 }
  0xbf   :  { %5190 = dma.done.wait [#allocation6], 2064  }
  0xc0   :  { %5191 = vsyncadd [#allocation6], 4294965232 }
  0xc1   :  { %5192 = dma.done.wait [#allocation9], 16400  }
  0xc2   :  { %5193 = vsyncadd [#allocation9], 4294950896 }
  0xc3   :  { %5194 = dma.done.wait [#allocation12], 9232  }
  0xc4   :  { %5195 = vsyncadd [#allocation12], 4294958064 }
  0xc5   :  { %5196 = dma.done.wait [#allocation15], 4160  }
  0xc6   :  { %5197 = vsyncadd [#allocation15], 4294963136 }
  0xc7   :  { %5198 = dma.done.wait [#allocation18], 4112  }
  0xc8   :  { %5199 = vsyncadd [#allocation18], 4294963184  ;;  %v4604_v0 = vld [vmem:[#allocation5 + $0x40] sm:$0xff]   ;;  %v4606_v2 = vld [vmem:[#allocation5 + $0x48] sm:$0xff]   ;;  %vm691_vm0 = vcmask 1040384   ;;  %vm736_vm1 = vcmask 1041408  }
  0xc9   :  { %v4605_v1 = vld [vmem:[#allocation5] sm:$0xff]   ;;  %4134 = vmatprep.subr.bf16.mxu0 %v4604_v0  ;;  %v4607_v3 = vld [vmem:[#allocation5 + $0x8] sm:$0xff]   ;;  %v4608_v4 = vld [vmem:[#allocation5 + $0x50] sm:$0xff]   ;;  %vm765_vm2 = vcmask 1042432   ;;  %vm798_vm3 = vcmask 1043456   ;;  %vm831_vm4 = vcmask 1044480  }
  0xca   :  { %4135 = vmatpush3.bf16.msra.mxu0 %v4605_v1  ;;  %v4609_v5 = vld [vmem:[#allocation5 + $0x10] sm:$0xff]   ;;  %v4610_v6 = vld [vmem:[#allocation5 + $0x58] sm:$0xff]   ;;  %v4612_v8 = vld [vmem:[#allocation5 + $0x60] sm:$0xff]   ;;  %vm864_vm5 = vcmask 1045504   ;;  %vm897_vm6 = vcmask 1046528   ;;  %vm5220_vm7 = vmmov 0  }
  0xcb   :  { %4136 = vmatprep.subr.bf16.mxu0 %v4606_v2  ;;  %v4611_v7 = vld [vmem:[#allocation5 + $0x18] sm:$0xff]   ;;  %v4613_v9 = vld [vmem:[#allocation5 + $0x20] sm:$0xff]   ;;  %v4614_v10 = vld [vmem:[#allocation5 + $0x68] sm:$0xff]   ;;  %s5222_s10 = smov [#allocation20]  }
  0xcc   :  { %v4622_v11 = vld [vmem:[#allocation2 + $0x4] ss:$8 sps:$4 sm:$0xff]   ;;  %v4616_v13 = vld [vmem:[#allocation5 + $0x70] sm:$0xff]   ;;  %v4618_v15 = vld [vmem:[#allocation5 + $0x78] sm:$0xff]   ;;  %s3820_s18 = sshll.u32 %s5222_s10, 4  ;;  %s3821_s18 = int_to_ptr.vmem [resolvable:$true] %s3820_s18 }
  0xcd   :  { %v4615_v12 = vld [vmem:[#allocation5 + $0x28] sm:$0xff]   ;;  %442 = vmatprep.mubr.bf16.mxu0 %v4622_v11  ;;  %v4617_v14 = vld [vmem:[#allocation5 + $0x30] sm:$0xff]   ;;  %v4619_v16 = vld [vmem:[#allocation5 + $0x38] sm:$0xff]   ;;  %s5166_s0 = scalar_lea.vmem %s3821_s18, 32  ;;  %p5171_p5 = scmp.lt.s32.totalorder %s3821_s18, %s3821_s18 }
  0xce   :  { %4137 = vmatpush3.bf16.msra.mxu0 %v4607_v3  ;;  %v4620_v17 = vld [vmem:[#allocation2] ss:$8 sps:$4 sm:$0xff]   ;;  %v4623_v18 = vld [vmem:[#allocation2 + $0x14] ss:$8 sps:$4 sm:$0xff]   ;;  %v4625_v19 = vld [vmem:[#allocation2 + $0x10] ss:$8 sps:$4 sm:$0xff]   ;;  %p5167_p4 = scmp.ne.s32.totalorder %s3821_s18, %s5166_s0  ;;  %p5172_p6 = scmp.lt.s32.totalorder %s5166_s0, %s5166_s0 }
  0xcf   :  { %4138 = vmatprep.subr.bf16.mxu0 %v4608_v4  ;;  %v4626_v20 = vld [vmem:[#allocation2 + $0x24] ss:$8 sps:$4 sm:$0xff]   ;;  %v4628_v21 = vld [vmem:[#allocation2 + $0x20] ss:$8 sps:$4 sm:$0xff]   ;;  %v4629_v22 = vld [vmem:[#allocation2 + $0x34] ss:$8 sps:$4 sm:$0xff]  }
  0xd0   :  { %v4631_v23 = vld [vmem:[#allocation2 + $0x30] ss:$8 sps:$4 sm:$0xff]   ;;  %v4632_v24 = vld [vmem:[#allocation2 + $0x44] ss:$8 sps:$4 sm:$0xff]   ;;  %v4634_v25 = vld [vmem:[#allocation2 + $0x40] ss:$8 sps:$4 sm:$0xff]   ;;  %p5173_p7 = por %p5172_p6, %p5171_p5 }
  0xd1   :  { %v4635_v26 = vld [vmem:[#allocation2 + $0x54] ss:$8 sps:$4 sm:$0xff]   ;;  %v4637_v27 = vld [vmem:[#allocation2 + $0x50] ss:$8 sps:$4 sm:$0xff]   ;;  %v4638_v28 = vld [vmem:[#allocation2 + $0x64] ss:$8 sps:$4 sm:$0xff]  }
  0xd2   :  { %4139 = vmatpush3.bf16.msra.mxu0 %v4609_v5  ;;  %v4640_v29 = vld [vmem:[#allocation2 + $0x60] ss:$8 sps:$4 sm:$0xff]   ;;  %v4641_v30 = vld [vmem:[#allocation2 + $0x74] ss:$8 sps:$4 sm:$0xff]   ;;  %v4643_v31 = vld [vmem:[#allocation2 + $0x70] ss:$8 sps:$4 sm:$0xff]   ;;  %p5174_p8 = pnand %p5173_p7, %p5167_p4 }
  0xd3   :  { %4140 = vmatprep.subr.bf16.mxu0 %v4610_v6  ;;  %v4644_v32 = vld [vmem:[#allocation8 + $0x40] sm:$0xff]   ;;  %v4646_v34 = vld [vmem:[#allocation8 + $0x48] sm:$0xff]   ;;  %v4648_v36 = vld [vmem:[#allocation8 + $0x50] sm:$0xff]  }
  0xd4   :  { %v4645_v33 = vld [vmem:[#allocation8] sm:$0xff]   ;;  %4198 = vmatprep.subr.bf16.mxu1 %v4644_v32  ;;  %v4647_v35 = vld [vmem:[#allocation8 + $0x8] sm:$0xff]   ;;  %v4650_v38 = vld [vmem:[#allocation8 + $0x10] sm:$0xff]  }
  0xd5   :  { %4199 = vmatpush3.bf16.msra.mxu1 %v4645_v33  ;;  %v4649_v37 = vld [vmem:[#allocation8 + $0x140] sm:$0xff]   ;;  %v4652_v40 = vld [vmem:[#allocation8 + $0x58] sm:$0xff]   ;;  %v4653_v41 = vld [vmem:[#allocation8 + $0x148] sm:$0xff]  }
  0xd6   :  { %4141 = vmatpush3.bf16.msra.mxu0 %v4611_v7  ;;  %4200 = vmatprep.subr.bf16.mxu1 %v4646_v34  ;;  %v4651_v39 = vld [vmem:[#allocation8 + $0x100] sm:$0xff]   ;;  %v4654_v42 = vld [vmem:[#allocation8 + $0x18] sm:$0xff]   ;;  %v4655_v43 = vld [vmem:[#allocation8 + $0x108] sm:$0xff]  }
  0xd7   :  { %4142 = vmatprep.subr.bf16.mxu0 %v4612_v8  ;;  %v4656_v44 = vld [vmem:[#allocation8 + $0x60] sm:$0xff]   ;;  %v4657_v45 = vld [vmem:[#allocation8 + $0x150] sm:$0xff]   ;;  %v4660_v48 = vld [vmem:[#allocation8 + $0x68] sm:$0xff]  }
  0xd8   :  { %v4658_v46 = vld [vmem:[#allocation8 + $0x20] sm:$0xff]   ;;  %v4659_v47 = vld [vmem:[#allocation8 + $0x110] sm:$0xff]   ;;  %v4661_v49 = vld [vmem:[#allocation8 + $0x158] sm:$0xff]  }
  0xd9   :  { %4201 = vmatpush3.bf16.msra.mxu1 %v4647_v35  ;;  %v4662_v50 = vld [vmem:[#allocation8 + $0x28] sm:$0xff]   ;;  %v4663_v51 = vld [vmem:[#allocation8 + $0x118] sm:$0xff]   ;;  %v4664_v52 = vld [vmem:[#allocation8 + $0x70] sm:$0xff]  }
  0xda   :  { %4143 = vmatpush3.bf16.msra.mxu0 %v4613_v9  ;;  %4202 = vmatprep.subr.bf16.mxu1 %v4648_v36  ;;  %v4665_v53 = vld [vmem:[#allocation8 + $0x160] sm:$0xff]   ;;  %v4666_v54 = vld [vmem:[#allocation8 + $0x30] sm:$0xff]   ;;  %v4668_v56 = vld [vmem:[#allocation8 + $0x78] sm:$0xff]  }
  0xdb   :  { %4144 = vmatprep.subr.bf16.mxu0 %v4614_v10  ;;  %v4667_v55 = vld [vmem:[#allocation8 + $0x120] sm:$0xff]   ;;  %v4669_v57 = vld [vmem:[#allocation8 + $0x168] sm:$0xff]   ;;  %v4670_v58 = vld [vmem:[#allocation8 + $0x38] sm:$0xff]  }
  0xdc   :  { %v4671_v59 = vld [vmem:[#allocation8 + $0x128] sm:$0xff]   ;;  %v4672_v60 = vld [vmem:[#allocation8 + $0xc0] sm:$0xff]   ;;  %v4673_v61 = vld [vmem:[#allocation8 + $0x170] sm:$0xff]  }
  0xdd   :  { %4203 = vmatpush3.bf16.msra.mxu1 %v4650_v38  ;;  %v4675_v62 = vld [vmem:[#allocation8 + $0x130] sm:$0xff]   ;;  %v4677_v63 = vld [vmem:[#allocation8 + $0x178] sm:$0xff]   ;;  %v4681_v1 = vld [vmem:[#allocation8 + $0x240] sm:$0xff]  }
  0xde   :  { %4145 = vmatpush3.bf16.msra.mxu0 %v4615_v12  ;;  %4204 = vmatprep.subr.bf16.mxu1 %v4652_v40  ;;  %v4679_v0 = vld [vmem:[#allocation8 + $0x138] sm:$0xff]  }
  0xdf   :  { %4146 = vmatprep.subr.bf16.mxu0 %v4616_v13  ;;  %v5434_v3 = vld [vmem:[#allocation7] ss:$0 sm:$0xff] }
  0xe1   :  { %4205 = vmatpush3.bf16.msra.mxu1 %v4654_v42 }
  0xe2   :  { %4147 = vmatpush3.bf16.msra.mxu0 %v4617_v14  ;;  %4206 = vmatprep.subr.bf16.mxu1 %v4656_v44 }
  0xe3   :  { %4148 = vmatprep.subr.bf16.mxu0 %v4618_v15 }
  0xe5   :  { %4207 = vmatpush3.bf16.msra.mxu1 %v4658_v46 }
  0xe6   :  { %4149 = vmatpush3.bf16.msra.mxu0 %v4619_v16  ;;  %4208 = vmatprep.subr.bf16.mxu1 %v4660_v48 }
  0xe7   :  { %4254 = vmatprep.subr.bf16.mxu0 %v4649_v37 }
  0xe9   :  { %443 = vmatmul.mubr.bf16.vlgmr.msra.gmra.mrb[0].mxu0 %v4620_v17  ;;  %4209 = vmatpush3.bf16.msra.mxu1 %v4662_v50 }
  0xea   :  { %450 = vmatprep.mubr.bf16.mxu0 %v4623_v18  ;;  %4255 = vmatpush3.bf16.msra.mxu0 %v4651_v39 }
  0xeb   :  { %4256 = vmatprep.subr.bf16.mxu0 %v4653_v41  ;;  %4210 = vmatprep.subr.bf16.mxu1 %v4664_v52 }
  0xed   :  { %4211 = vmatpush3.bf16.msra.mxu1 %v4666_v54 }
  0xee   :  { %4257 = vmatpush3.bf16.msra.mxu0 %v4655_v43  ;;  %4212 = vmatprep.subr.bf16.mxu1 %v4668_v56 }
  0xef   :  { %4258 = vmatprep.subr.bf16.mxu0 %v4657_v45 }
  0xf1   :  { %451 = vmatmul.mubr.bf16.gmra.mrb[4].mxu0 %v4625_v19  ;;  %4213 = vmatpush3.bf16.msra.mxu1 %v4670_v58 }
  0xf2   :  { %458 = vmatprep.mubr.bf16.mxu0 %v4626_v20  ;;  %4259 = vmatpush3.bf16.msra.mxu0 %v4659_v47 }
  0xf3   :  { %4260 = vmatprep.subr.bf16.mxu0 %v4661_v49  ;;  %4226 = vmatprep.subr.bf16.mxu1 %v4672_v60 }
  0xf6   :  { %4261 = vmatpush3.bf16.msra.mxu0 %v4663_v51 }
  0xf7   :  { %4262 = vmatprep.subr.bf16.mxu0 %v4665_v53 }
  0xf9   :  { %459 = vmatmul.mubr.bf16.gmra.mrb[8].mxu0 %v4628_v21 }
  0xfa   :  { %466 = vmatprep.mubr.bf16.mxu0 %v4629_v22  ;;  %4263 = vmatpush3.bf16.msra.mxu0 %v4667_v55 }
  0xfb   :  { %4264 = vmatprep.subr.bf16.mxu0 %v4669_v57 }
  0xfe   :  { %4265 = vmatpush3.bf16.msra.mxu0 %v4671_v59 }
  0xff   :  { %4266 = vmatprep.subr.bf16.mxu0 %v4673_v61 }
 0x101   :  { %467 = vmatmul.mubr.bf16.gmra.mrb[12].mxu0 %v4631_v23 }
 0x102   :  { %474 = vmatprep.mubr.bf16.mxu0 %v4632_v24  ;;  %4267 = vmatpush3.bf16.msra.mxu0 %v4675_v62 }
 0x103   :  { %4268 = vmatprep.subr.bf16.mxu0 %v4677_v63 }
 0x106   :  { %4269 = vmatpush3.bf16.msra.mxu0 %v4679_v0 }
 0x107   :  { %4310 = vmatprep.subr.bf16.mxu0 %v4681_v1 }
 0x109   :  { %475 = vmatmul.mubr.bf16.gmra.mrb[16].mxu0 %v4634_v25 }
 0x10a   :  { %482 = vmatprep.mubr.bf16.mxu0 %v4635_v26 }
 0x111   :  { %483 = vmatmul.mubr.bf16.gmra.mrb[20].mxu0 %v4637_v27 }
 0x112   :  { %490 = vmatprep.mubr.bf16.mxu0 %v4638_v28 }
 0x119   :  { %491 = vmatmul.mubr.bf16.gmra.mrb[24].mxu0 %v4640_v29 }
 0x11a   :  { %498 = vmatprep.mubr.bf16.mxu0 %v4641_v30 }
 0x121   :  { %499 = vmatmul.mubr.bf16.gmra.mrb[28].mxu0 %v4643_v31 }
 0x1bc   :  { %v4150_v2 = vpop.f32.mrb[0].mxu0 }
 0x1bd   :  { %v4151_v4 = vpop.f32.mrb[1].mxu0 }
 0x1be   :  { %v4152_v5 = vadd.f32 %v4151_v4, %v4150_v2  ;;  %v4153_v6 = vpop.f32.mrb[2].mxu0 }
 0x1bf   :  { %v4154_v7 = vpop.f32.mrb[3].mxu0 }
 0x1c0   :  { %v445_v8 = vadd.f32 %v4152_v5, %v5434_v3  ;;  %v4155_v9 = vadd.f32 %v4154_v7, %v4153_v6 }
 0x1c2   :  { %v448_v10 = vadd.f32 %v4155_v9, %v5434_v3  ;;  %v507_v11 = vmax.f32 %v445_v8, 0.0 }
 0x1c4   :  { %v508_v12 = vmax.f32 %v448_v10, 0.0  ;;  %v4156_v13 = vpop.f32.mrb[4].mxu0 }
 0x1c5   :  { %v4157_v14 = vpop.f32.mrb[5].mxu0 }
 0x1c6   :  { %v523_v15 = vpack.c.bf16 %v508_v12, %v507_v11  ;;  %v4158_v16 = vadd.f32 %v4157_v14, %v4156_v13  ;;  %v4159_v17 = vpop.f32.mrb[6].mxu0 }
 0x1c7   :  { %v4160_v18 = vpop.f32.mrb[7].mxu0 }
 0x1c8   :  { %v534_v19 = vrot.slane %v523_v15, 3  ;;  %v453_v20 = vadd.f32 %v4158_v16, %v5434_v3  ;;  %v4161_v21 = vadd.f32 %v4160_v18, %v4159_v17  ;;  %v532_v22 = vrot.slane %v523_v15, 1 }
 0x1c9   :  { %v533_v23 = vrot.slane %v523_v15, 2 }
 0x1ca   :  { %v456_v24 = vadd.f32 %v4161_v21, %v5434_v3  ;;  %v565_v26 = vrot.slane %v534_v19, 1  ;;  %v509_v27 = vmax.f32 %v453_v20, 0.0  ;;  %v563_v33 = vrot.slane %v532_v22, 1 }
 0x1cb   :  { %v564_v30 = vrot.slane %v533_v23, 1  ;;  %v576_v34 = vrot.slane %v533_v23, 2  ;;  %v694_v37 = vsel %vm691_vm0, %v523_v15, %v532_v22  ;;  %v575_v40 = vrot.slane %v532_v22, 2 }
 0x1cc   :  { %v4162_v25 = vpop.f32.mrb[8].mxu0  ;;  %v510_v28 = vmax.f32 %v456_v24, 0.0  ;;  %v577_v43 = vrot.slane %v534_v19, 2  ;;  %v702_v44 = vsel %vm691_vm0, %v534_v19, %v565_v26  ;;  %v696_v47 = vsel %vm691_vm0, %v532_v22, %v563_v33 }
 0x1cd   :  { %v4163_v29 = vpop.f32.mrb[9].mxu0  ;;  %v699_v48 = vsel %vm691_vm0, %v533_v23, %v564_v30  ;;  %v737_v49 = vsel %vm736_vm1, %v694_v37, %v533_v23  ;;  %v739_v57 = vsel %vm736_vm1, %v696_v47, %v575_v40 }
 0x1ce   :  { %v4164_v31 = vadd.f32 %v4163_v29, %v4162_v25  ;;  %v4165_v32 = vpop.f32.mrb[10].mxu0  ;;  %v524_v35 = vpack.c.bf16 %v510_v28, %v509_v27  ;;  %v743_v58 = vsel %vm736_vm1, %v702_v44, %v577_v43  ;;  %v5460_v59 = vsel %vm736_vm1, %v699_v48, %v576_v34 }
 0x1cf   :  { %v4166_v36 = vpop.f32.mrb[11].mxu0 }
 0x1d0   :  { %v461_v38 = vadd.f32 %v4164_v31, %v5434_v3  ;;  %v4167_v39 = vadd.f32 %v4166_v36, %v4165_v32  ;;  %v5442_v41 = vrot.slane %v524_v35, 1  ;;  %v5444_v42 = vrot.slane %v524_v35, 2 }
 0x1d1   :  { %v5447_v45 = vrot.slane %v524_v35, 3 }
 0x1d2   :  { %v464_v46 = vadd.f32 %v4167_v39, %v5434_v3  ;;  %v705_v50 = vsel %vm691_vm0, %v524_v35, %v5442_v41  ;;  %v511_v51 = vmax.f32 %v461_v38, 0.0  ;;  %v566_v54 = vrot.slane %v5442_v41, 1 }
 0x1d3   :  { %v567_v55 = vrot.slane %v5444_v42, 1  ;;  %v568_v60 = vrot.slane %v5447_v45, 1  ;;  %v579_v61 = vrot.slane %v5444_v42, 2  ;;  %v744_v1 = vsel %vm736_vm1, %v705_v50, %v5444_v42 }
 0x1d4   :  { %v512_v52 = vmax.f32 %v464_v46, 0.0  ;;  %v4168_v53 = vpop.f32.mrb[12].mxu0  ;;  %v578_v4 = vrot.slane %v5442_v41, 2  ;;  %v707_v5 = vsel %vm691_vm0, %v5442_v41, %v566_v54  ;;  %v580_v6 = vrot.slane %v5447_v45, 2 }
 0x1d5   :  { %v4169_v56 = vpop.f32.mrb[13].mxu0  ;;  %v713_v43 = vsel %vm691_vm0, %v5447_v45, %v568_v60 }
 0x1d6   :  { %v5464_v62 = vpack.c.bf16 %v512_v52, %v511_v51  ;;  %v4170_v63 = vadd.f32 %v4169_v56, %v4168_v53  ;;  %v4171_v0 = vpop.f32.mrb[14].mxu0  ;;  %v746_v39 = vsel %vm736_vm1, %v707_v5, %v578_v4 }
 0x1d7   :  { %v4172_v2 = vpop.f32.mrb[15].mxu0 }
 0x1d8   :  { %v5473_v7 = vrot.slane %v5464_v62, 1  ;;  %v5476_v8 = vrot.slane %v5464_v62, 2  ;;  %v469_v9 = vadd.f32 %v4170_v63, %v5434_v3  ;;  %v4173_v10 = vadd.f32 %v4172_v2, %v4171_v0 }
 0x1d9   :  { %v587_v11 = vrot.slane %v5464_v62, 5  ;;  %v603_v12 = vrot.slane %v5464_v62, 6  ;;  %v619_v13 = vrot.slane %v5464_v62, 7  ;;  %v5483_v14 = vrot.slane %v5464_v62, 3 }
 0x1da   :  { %v513_v15 = vmax.f32 %v469_v9, 0.0  ;;  %v472_v16 = vadd.f32 %v4173_v10, %v5434_v3  ;;  %v588_v17 = vrot.slane %v5473_v7, 5  ;;  %v604_v18 = vrot.slane %v5473_v7, 6 }
 0x1db   :  { %v620_v19 = vrot.slane %v5473_v7, 7  ;;  %v767_v20 = vsel %vm765_vm2, %v737_v49, %v587_v11  ;;  %v590_v21 = vrot.slane %v5483_v14, 5  ;;  %v606_v22 = vrot.slane %v5483_v14, 6 }
 0x1dc   :  { %v514_v23 = vmax.f32 %v472_v16, 0.0  ;;  %v4174_v24 = vpop.f32.mrb[16].mxu0  ;;  %v769_v25 = vsel %vm765_vm2, %v739_v57, %v588_v17  ;;  %v800_v26 = vsel %vm798_vm3, %v767_v20, %v603_v12  ;;  %v622_v27 = vrot.slane %v5483_v14, 7 }
 0x1dd   :  { %v4175_v28 = vpop.f32.mrb[17].mxu0  ;;  %v802_v29 = vsel %vm798_vm3, %v769_v25, %v604_v18  ;;  %v5497_v30 = vsel %vm831_vm4, %v800_v26, %v619_v13  ;;  %v773_v31 = vsel %vm765_vm2, %v743_v58, %v590_v21  ;;  %v569_v32 = vrot.slane %v5473_v7, 1 }
 0x1de   :  { %v5501_v33 = vpack.c.bf16 %v514_v23, %v513_v15  ;;  %v4176_v34 = vadd.f32 %v4175_v28, %v4174_v24  ;;  %v4177_v35 = vpop.f32.mrb[18].mxu0  ;;  %v5504_v36 = vsel %vm831_vm4, %v802_v29, %v620_v19  ;;  %v806_v37 = vsel %vm798_vm3, %v773_v31, %v606_v22 }
 0x1df   :  { %v4178_v38 = vpop.f32.mrb[19].mxu0  ;;  %v5509_v40 = vsel %vm831_vm4, %v806_v37, %v622_v27  ;;  %v581_v41 = vrot.slane %v5473_v7, 2  ;;  %v589_v48 = vrot.slane %v5476_v8, 5  ;;  %v718_v52 = vsel %vm691_vm0, %v5473_v7, %v569_v32 }
 0x1e0   :  { %v5515_v44 = vrot.slane %v5501_v33, 1  ;;  %v477_v46 = vadd.f32 %v4176_v34, %v5434_v3  ;;  %v4179_v47 = vadd.f32 %v4178_v38, %v4177_v35  ;;  %v591_v49 = vrot.slane %v5501_v33, 5 }
 0x1e1   :  { %v607_v50 = vrot.slane %v5501_v33, 6  ;;  %v623_v51 = vrot.slane %v5501_v33, 7  ;;  %v605_v63 = vrot.slane %v5476_v8, 6  ;;  %v621_v0 = vrot.slane %v5476_v8, 7 }
 0x1e2   :  { %v515_v53 = vmax.f32 %v477_v46, 0.0  ;;  %v480_v54 = vadd.f32 %v4179_v47, %v5434_v3  ;;  %v592_v56 = vrot.slane %v5515_v44, 5  ;;  %v608_v57 = vrot.slane %v5515_v44, 6  ;;  %v4674_v47 = vld [vmem:[#allocation8 + $0x80] sm:$0xff]  }
 0x1e3   :  { %v624_v58 = vrot.slane %v5515_v44, 7  ;;  %v775_v60 = vsel %vm765_vm2, %v744_v1, %v591_v49  ;;  %v771_v10 = vsel %vm765_vm2, %v5460_v59, %v589_v48  ;;  %v716_v15 = vsel %vm691_vm0, %v5464_v62, %v5473_v7 }
 0x1e4   :  { %v516_v2 = vmax.f32 %v480_v54, 0.0  ;;  %v4180_v4 = vpop.f32.mrb[20].mxu0  ;;  %v777_v5 = vsel %vm765_vm2, %v746_v39, %v592_v56  ;;  %v808_v9 = vsel %vm798_vm3, %v775_v60, %v607_v50  ;;  %v804_v1 = vsel %vm798_vm3, %v771_v10, %v605_v63 }
 0x1e5   :  { %v4181_v11 = vpop.f32.mrb[21].mxu0  ;;  %v810_v12 = vsel %vm798_vm3, %v777_v5, %v608_v57  ;;  %v5537_v13 = vsel %vm831_vm4, %v808_v9, %v623_v51  ;;  %v837_v59 = vsel %vm831_vm4, %v804_v1, %v621_v0  ;;  %v5550_v20 = vrot.slane %v5501_v33, 2  ;;  %v4676_v51 = vld [vmem:[#allocation8 + $0xc8] sm:$0xff]  }
 0x1e6   :  { %v5543_v16 = vpack.c.bf16 %v516_v2, %v515_v53  ;;  %v4182_v17 = vadd.f32 %v4181_v11, %v4180_v4  ;;  %v4183_v18 = vpop.f32.mrb[22].mxu0  ;;  %v5546_v19 = vsel %vm831_vm4, %v810_v12, %v624_v58  ;;  %v753_v22 = vsel %vm736_vm1, %v718_v52, %v581_v41  ;;  %v4678_v11 = vld [vmem:[#allocation8 + $0x88] sm:$0xff]   ;;  %v4680_v12 = vld [vmem:[#allocation8 + $0xd0] sm:$0xff]  }
 0x1e7   :  { %v4184_v21 = vpop.f32.mrb[23].mxu0  ;;  %v5556_v23 = vsel %vm736_vm1, %v713_v43, %v580_v6  ;;  %v5562_v62 = vsel %vm691_vm0, %v5444_v42, %v567_v55  ;;  %v5574_v45 = vsel %vm736_vm1, %v716_v15, %v5476_v8  ;;  %v5577_v6 = vrot.slane %v5501_v33, 3 }
 0x1e8   :  { %v485_v7 = vadd.f32 %v4182_v17, %v5434_v3  ;;  %v4185_v24 = vadd.f32 %v4184_v21, %v4183_v18  ;;  %v548_v25 = vrot.slane %v5543_v16, 1  ;;  %v5567_v26 = vrot.slane %v5543_v16, 2 }
 0x1e9   :  { %v5570_v27 = vrot.slane %v5543_v16, 3  ;;  %v572_v55 = vrot.slane %v5515_v44, 1  ;;  %v595_v38 = vrot.slane %v5543_v16, 5  ;;  %v611_v18 = vrot.slane %v5543_v16, 6 }
 0x1ea   :  { %v517_v28 = vmax.f32 %v485_v7, 0.0  ;;  %v488_v29 = vadd.f32 %v4185_v24, %v5434_v3  ;;  %v635_v31 = vrot.slane %v548_v25, 2  ;;  %v647_v32 = vrot.slane %v548_v25, 3 }
 0x1eb   :  { %v866_v34 = vsel %vm864_vm5, %v5497_v30, %v5567_v26  ;;  %v637_v35 = vrot.slane %v5570_v27, 2  ;;  %v649_v37 = vrot.slane %v5570_v27, 3  ;;  %v596_v48 = vrot.slane %v548_v25, 5 }
 0x1ec   :  { %v518_v39 = vmax.f32 %v488_v29, 0.0  ;;  %v4186_v41 = vpop.f32.mrb[24].mxu0  ;;  %v868_v43 = vsel %vm864_vm5, %v5504_v36, %v635_v31  ;;  %v899_v46 = vsel %vm897_vm6, %v866_v34, %v5570_v27  ;;  %v660_v30 = vrot.slane %v548_v25, 4  ;;  %v4682_v34 = vld [vmem:[#allocation8 + $0x90] sm:$0xff]  }
 0x1ed   :  { %v4187_v49 = vpop.f32.mrb[25].mxu0  ;;  %v902_v50 = vsel %vm897_vm6, %v868_v43, %v647_v32  ;;  %v872_v52 = vsel %vm864_vm5, %v5509_v40, %v637_v35  ;;  %v612_v53 = vrot.slane %v548_v25, 6  ;;  %v785_v58 = vsel %vm765_vm2, %v753_v22, %v596_v48  ;;  %v4683_v43 = vld [vmem:[#allocation8 + $0x200] sm:$0xff]  }
 0x1ee   :  { %v5594_v54 = vpack.c.bf16 %v518_v39, %v517_v28  ;;  %v4188_v56 = vadd.f32 %v4187_v49, %v4186_v41  ;;  %v4189_v57 = vpop.f32.mrb[26].mxu0  ;;  %2009 = vmatprep.mubr.bf16.mxu1 %v902_v50  ;;  %v5597_v36 = vsel %vm897_vm6, %v872_v52, %v649_v37  ;;  %v628_v63 = vrot.slane %v548_v25, 7 }
 0x1ef   :  { %v4190_v60 = vpop.f32.mrb[27].mxu0  ;;  %2010 = vmatmul.mubr.bf16.vlgmr.msra.gmra.mrb[0].mxu1 %v899_v46  ;;  %v818_v0 = vsel %vm798_vm3, %v785_v58, %v612_v53  ;;  %v636_v2 = vrot.slane %v5567_v26, 2  ;;  %v648_v40 = vrot.slane %v5567_v26, 3  ;;  %v659_v29 = vrot.slane %v5543_v16, 4 }
 0x1f0   :  { %v5604_v4 = vrot.slane %v5594_v54, 2  ;;  %v5607_v5 = vrot.slane %v5594_v54, 3  ;;  %v493_v9 = vadd.f32 %v4188_v56, %v5434_v3  ;;  %v4191_v10 = vadd.f32 %v4190_v60, %v4189_v57  ;;  %4227 = vmatpush3.bf16.msra.mxu1 %v4674_v47  ;;  %2017 = vmatprep.mubr.bf16.mxu1 %v660_v30 }
 0x1f1   :  { %4228 = vmatprep.subr.bf16.mxu1 %v4676_v51  ;;  %v5611_v1 = vrot.slane %v5594_v54, 1  ;;  %v5614_v15 = vsel %vm831_vm4, %v818_v0, %v628_v63  ;;  %v870_v17 = vsel %vm864_vm5, %v837_v59, %v636_v2  ;;  %v783_v37 = vsel %vm765_vm2, %v5574_v45, %v595_v38  ;;  %v4684_v51 = vld [vmem:[#allocation8 + $0xd8] sm:$0xff]   ;;  %v4685_v45 = vld [vmem:[#allocation8 + $0x248] sm:$0xff]  }
 0x1f2   :  { %v519_v21 = vmax.f32 %v493_v9, 0.0  ;;  %v496_v22 = vadd.f32 %v4191_v10, %v5434_v3  ;;  %v874_v7 = vsel %vm864_vm5, %v5537_v13, %v5604_v4  ;;  %v5623_v24 = vsel %vm897_vm6, %v870_v17, %v648_v40  ;;  %v4686_v2 = vld [vmem:[#allocation8 + $0x98] sm:$0xff]   ;;  %v4687_v40 = vld [vmem:[#allocation8 + $0x208] sm:$0xff]   ;;  %v4688_v9 = vld [vmem:[#allocation8 + $0xe0] sm:$0xff]  }
 0x1f3   :  { %v638_v25 = vrot.slane %v5611_v1, 2  ;;  %v650_v28 = vrot.slane %v5611_v1, 3  ;;  %v911_v59 = vsel %vm897_vm6, %v874_v7, %v5607_v5  ;;  %v664_v35 = vrot.slane %v5611_v1, 4 }
 0x1f4   :  { %v520_v31 = vmax.f32 %v496_v22, 0.0  ;;  %4229 = vmatpush3.bf16.msra.mxu1 %v4678_v11  ;;  %v4192_v32 = vpop.f32.mrb[28].mxu0  ;;  %v627_v13 = vrot.slane %v5543_v16, 7  ;;  %v816_v46 = vsel %vm798_vm3, %v783_v37, %v611_v18  ;;  %v594_v47 = vrot.slane %v5577_v6, 5 }
 0x1f5   :  { %v4193_v39 = vpop.f32.mrb[29].mxu0  ;;  %4230 = vmatprep.subr.bf16.mxu1 %v4680_v12  ;;  %v876_v41 = vsel %vm864_vm5, %v5546_v19, %v638_v25  ;;  %v610_v48 = vrot.slane %v5577_v6, 6  ;;  %v626_v19 = vrot.slane %v5577_v6, 7  ;;  %v640_v53 = vrot.slane %v5607_v5, 2 }
 0x1f6   :  { %v5639_v49 = vpack.c.bf16 %v520_v31, %v519_v21  ;;  %v4194_v50 = vadd.f32 %v4193_v39, %v4192_v32  ;;  %v4195_v30 = vpop.f32.mrb[30].mxu0  ;;  %v914_v16 = vsel %vm897_vm6, %v876_v41, %v650_v28  ;;  %v849_v38 = vsel %vm831_vm4, %v816_v46, %v627_v13  ;;  %v4689_v21 = vld [vmem:[#allocation8 + $0x250] sm:$0xff]  }
 0x1f7   :  { %2105 = vmatprep.mubr.bf16.mxu0 %v914_v16  ;;  %v4196_v52 = vpop.f32.mrb[31].mxu0  ;;  %2018 = vmatmul.mubr.bf16.gmra.mrb[4].mxu1 %v659_v29  ;;  %v652_v56 = vrot.slane %v5607_v5, 3  ;;  %v781_v57 = vsel %vm765_vm2, %v5556_v23, %v594_v47  ;;  %v584_v11 = vrot.slane %v5515_v44, 2  ;;  %v600_v12 = vrot.slane %v5611_v1, 5  ;;  %v4692_v47 = vld [vmem:[#allocation8 + $0xe8] sm:$0xff]  }
 0x1f8   :  { %v5649_v58 = vrot.slane %v5639_v49, 2  ;;  %v5652_v60 = vrot.slane %v5639_v49, 3  ;;  %v501_v63 = vadd.f32 %v4194_v50, %v5434_v3  ;;  %v4197_v0 = vadd.f32 %v4196_v52, %v4195_v30  ;;  %4231 = vmatpush3.bf16.msra.mxu1 %v4682_v34  ;;  %2106 = vmatmul.mubr.bf16.vlgmr.msra.gmra.mrb[32].mxu0 %v911_v59  ;;  %v4690_v59 = vld [vmem:[#allocation8 + $0xa0] sm:$0xff]   ;;  %v4694_v16 = vld [vmem:[#allocation8 + $0xa8] sm:$0xff]  }
 0x1f9   :  { %4311 = vmatpush3.bf16.msra.mxu0 %v4683_v43  ;;  %2057 = vmatprep.mubr.bf16.mxu1 %v5597_v36  ;;  %v5657_v10 = vrot.slane %v5639_v49, 1  ;;  %v814_v23 = vsel %vm798_vm3, %v781_v57, %v610_v48  ;;  %v663_v31 = vrot.slane %v5594_v54, 4  ;;  %v616_v34 = vrot.slane %v5611_v1, 6  ;;  %v4693_v48 = vld [vmem:[#allocation8 + $0x258] sm:$0xff]   ;;  %v4697_v57 = vld [vmem:[#allocation8 + $0x260] sm:$0xff]  }
 0x1fa   :  { %v521_v17 = vmax.f32 %v501_v63, 0.0  ;;  %v504_v18 = vadd.f32 %v4197_v0, %v5434_v3  ;;  %4232 = vmatprep.subr.bf16.mxu1 %v4684_v51  ;;  %4312 = vmatprep.subr.bf16.mxu0 %v4685_v45  ;;  %v882_v36 = vsel %vm864_vm5, %v849_v38, %v5649_v58  ;;  %v847_v22 = vsel %vm831_vm4, %v814_v23, %v626_v19 }
 0x1fb   :  { %2113 = vmatprep.mubr.bf16.mxu0 %v664_v35  ;;  %v641_v7 = vrot.slane %v5657_v10, 2  ;;  %v653_v25 = vrot.slane %v5657_v10, 3  ;;  %v5670_v28 = vsel %vm897_vm6, %v882_v36, %v5652_v60  ;;  %v880_v29 = vsel %vm864_vm5, %v847_v22, %v640_v53  ;;  %v4691_v35 = vld [vmem:[#allocation8 + $0x210] sm:$0xff]  }
 0x1fc   :  { %v522_v3 = vmax.f32 %v504_v18, 0.0  ;;  %4233 = vmatpush3.bf16.msra.mxu1 %v4686_v2  ;;  %v5675_v32 = vsel %vm897_vm6, %v880_v29, %v652_v56  ;;  %v632_v37 = vrot.slane %v5611_v1, 7  ;;  %v729_v39 = vsel %vm691_vm0, %v5515_v44, %v572_v55 }
 0x1fd   :  { %4313 = vmatpush3.bf16.msra.mxu0 %v4687_v40  ;;  %4234 = vmatprep.subr.bf16.mxu1 %v4688_v9  ;;  %v884_v13 = vsel %vm864_vm5, %v5614_v15, %v641_v7  ;;  %v593_v41 = vrot.slane %v5550_v20, 5  ;;  %v760_v50 = vsel %vm736_vm1, %v729_v39, %v584_v11  ;;  %v609_v15 = vrot.slane %v5550_v20, 6  ;;  %v4699_v7 = vld [vmem:[#allocation8 + $0x220] sm:$0xff]  }
 0x1fe   :  { %v5686_v43 = vpack.c.bf16 %v522_v3, %v521_v17  ;;  %4314 = vmatprep.subr.bf16.mxu0 %v4689_v21  ;;  %v926_v46 = vsel %vm897_vm6, %v884_v13, %v653_v25  ;;  %v793_v1 = vsel %vm765_vm2, %v760_v50, %v600_v12  ;;  %v625_v30 = vrot.slane %v5550_v20, 7  ;;  %v4698_v17 = vld [vmem:[#allocation8 + $0xb0] sm:$0xff]   ;;  %v4700_v25 = vld [vmem:[#allocation8 + $0xf8] sm:$0xff]   ;;  %v4701_v3 = vld [vmem:[#allocation8 + $0x268] sm:$0xff]  }
 0x1ff   :  { %v748_v55 = vsel %vm736_vm1, %v5562_v62, %v579_v61  ;;  %v826_v45 = vsel %vm798_vm3, %v793_v1, %v616_v34  ;;  %v639_v38 = vrot.slane %v5604_v4, 2  ;;  %v651_v52 = vrot.slane %v5604_v4, 3  ;;  %v4695_v61 = vld [vmem:[#allocation8 + $0x218] sm:$0xff]   ;;  %v4696_v62 = vld [vmem:[#allocation8 + $0xf0] sm:$0xff]   ;;  %v4704_v1 = vld [vmem:[#allocation8 + $0x1c0] sm:$0xff]  }
 0x200   :  { %4235 = vmatpush3.bf16.msra.mxu1 %v4690_v59  ;;  %2114 = vmatmul.mubr.bf16.gmra.mrb[36].mxu0 %v663_v31  ;;  %v5698_v51 = vrot.slane %v5686_v43, 1  ;;  %v5704_v19 = vrot.slane %v5686_v43, 2  ;;  %v5707_v42 = vrot.slane %v5686_v43, 3  ;;  %v859_v53 = vsel %vm831_vm4, %v826_v45, %v632_v37  ;;  %v4705_v45 = vld [vmem:[#allocation8 + $0x270] sm:$0xff]  }
 0x201   :  { %4315 = vmatpush3.bf16.msra.mxu0 %v4691_v35  ;;  %2201 = vmatprep.mubr.bf16.mxu0 %v926_v46  ;;  %v779_v56 = vsel %vm765_vm2, %v748_v55, %v593_v41  ;;  %v599_v40 = vrot.slane %v5594_v54, 5  ;;  %v615_v23 = vrot.slane %v5594_v54, 6  ;;  %v631_v11 = vrot.slane %v5594_v54, 7  ;;  %v4702_v41 = vld [vmem:[#allocation8 + $0xb8] sm:$0xff]  }
 0x202   :  { %4236 = vmatprep.subr.bf16.mxu1 %v4692_v47  ;;  %4316 = vmatprep.subr.bf16.mxu0 %v4693_v48  ;;  %v644_v63 = vrot.slane %v5698_v51, 2  ;;  %v656_v0 = vrot.slane %v5698_v51, 3  ;;  %v812_v2 = vsel %vm798_vm3, %v779_v56, %v609_v15  ;;  %v727_v12 = vsel %vm691_vm0, %v5501_v33, %v5515_v44  ;;  %v4703_v15 = vld [vmem:[#allocation8 + $0x228] sm:$0xff]  }
 0x203   :  { %v845_v9 = vsel %vm831_vm4, %v812_v2, %v625_v30  ;;  %v758_v36 = vsel %vm736_vm1, %v727_v12, %v5550_v20  ;;  %v571_v22 = vrot.slane %v5483_v14, 1  ;;  %v583_v29 = vrot.slane %v5483_v14, 2 }
 0x204   :  { %4237 = vmatpush3.bf16.msra.mxu1 %v4694_v16  ;;  %v892_v18 = vsel %vm864_vm5, %v859_v53, %v644_v63  ;;  %v878_v21 = vsel %vm864_vm5, %v845_v9, %v639_v38  ;;  %v791_v44 = vsel %vm765_vm2, %v758_v36, %v599_v40  ;;  %v598_v31 = vrot.slane %v5570_v27, 5  ;;  %v4707_v9 = vld [vmem:[#allocation8 + $0x230] sm:$0xff]  }
 0x205   :  { %4317 = vmatpush3.bf16.msra.mxu0 %v4695_v61  ;;  %4238 = vmatprep.subr.bf16.mxu1 %v4696_v62  ;;  %v5727_v54 = vsel %vm897_vm6, %v892_v18, %v656_v0  ;;  %v5730_v33 = vsel %vm897_vm6, %v878_v21, %v651_v52  ;;  %v824_v59 = vsel %vm798_vm3, %v791_v44, %v615_v23  ;;  %v614_v34 = vrot.slane %v5570_v27, 6  ;;  %v4708_v23 = vld [vmem:[#allocation8 + $0x1c8] sm:$0xff]   ;;  %v4709_v21 = vld [vmem:[#allocation8 + $0x278] sm:$0xff]  }
 0x206   :  { %4318 = vmatprep.subr.bf16.mxu0 %v4697_v57  ;;  %v857_v35 = vsel %vm831_vm4, %v824_v59, %v631_v11  ;;  %v630_v13 = vrot.slane %v5570_v27, 7  ;;  %v643_v37 = vrot.slane %v5652_v60, 2  ;;  %v724_v39 = vsel %vm691_vm0, %v5483_v14, %v571_v22  ;;  %v4706_v57 = vld [vmem:[#allocation8 + $0x180] sm:$0xff]  }
 0x207   :  { %v890_v46 = vsel %vm864_vm5, %v857_v35, %v5704_v19  ;;  %v757_v47 = vsel %vm736_vm1, %v724_v39, %v583_v29  ;;  %v570_v48 = vrot.slane %v5476_v8, 1  ;;  %v582_v50 = vrot.slane %v5476_v8, 2  ;;  %v4712_v35 = vld [vmem:[#allocation8 + $0x1d0] sm:$0xff]  }
 0x208   :  { %4239 = vmatpush3.bf16.msra.mxu1 %v4698_v17  ;;  %v5749_v30 = vsel %vm897_vm6, %v890_v46, %v5707_v42  ;;  %v655_v14 = vrot.slane %v5652_v60, 3  ;;  %v789_v55 = vsel %vm765_vm2, %v757_v47, %v598_v31  ;;  %v597_v16 = vrot.slane %v5567_v26, 5 }
 0x209   :  { %4319 = vmatpush3.bf16.msra.mxu0 %v4699_v7  ;;  %4240 = vmatprep.subr.bf16.mxu1 %v4700_v25  ;;  %v822_v38 = vsel %vm798_vm3, %v789_v55, %v614_v34  ;;  %v613_v52 = vrot.slane %v5567_v26, 6  ;;  %v629_v62 = vrot.slane %v5567_v26, 7  ;;  %v642_v53 = vrot.slane %v5649_v58, 2  ;;  %v4711_v34 = vld [vmem:[#allocation8 + $0x238] sm:$0xff]  }
 0x20a   :  { %4320 = vmatprep.subr.bf16.mxu0 %v4701_v3  ;;  %v855_v61 = vsel %vm831_vm4, %v822_v38, %v630_v13  ;;  %v721_v56 = vsel %vm691_vm0, %v5476_v8, %v570_v48  ;;  %v654_v0 = vrot.slane %v5649_v58, 3  ;;  %v574_v40 = vrot.slane %v5577_v6, 1  ;;  %v4710_v3 = vld [vmem:[#allocation8 + $0x188] sm:$0xff]   ;;  %v4715_v38 = vld [vmem:[#allocation8 + $0x300] sm:$0xff]  }
 0x20b   :  { %v888_v63 = vsel %vm864_vm5, %v855_v61, %v643_v37  ;;  %v755_v2 = vsel %vm736_vm1, %v721_v56, %v582_v50  ;;  %v586_v8 = vrot.slane %v5577_v6, 2  ;;  %v602_v17 = vrot.slane %v5607_v5, 5 }
 0x20c   :  { %4241 = vmatpush3.bf16.msra.mxu1 %v4702_v41  ;;  %v5766_v11 = vsel %vm897_vm6, %v888_v63, %v655_v14  ;;  %v787_v12 = vsel %vm765_vm2, %v755_v2, %v597_v16  ;;  %v662_v18 = vrot.slane %v5570_v27, 4  ;;  %v618_v22 = vrot.slane %v5607_v5, 6  ;;  %v4713_v41 = vld [vmem:[#allocation8 + $0x340] sm:$0xff]   ;;  %v4719_v2 = vld [vmem:[#allocation8 + $0x308] sm:$0xff]  }
 0x20d   :  { %4321 = vmatpush3.bf16.msra.mxu0 %v4703_v15  ;;  %4282 = vmatprep.subr.bf16.mxu1 %v4704_v1  ;;  %v820_v36 = vsel %vm798_vm3, %v787_v12, %v613_v52  ;;  %v634_v25 = vrot.slane %v5607_v5, 7  ;;  %v646_v44 = vrot.slane %v5707_v42, 2  ;;  %v735_v29 = vsel %vm691_vm0, %v5577_v6, %v574_v40  ;;  %v4714_v1 = vld [vmem:[#allocation8 + $0x190] sm:$0xff]   ;;  %v4720_v40 = vld [vmem:[#allocation8 + $0x1e0] sm:$0xff]  }
 0x20e   :  { %4322 = vmatprep.subr.bf16.mxu0 %v4705_v45  ;;  %v853_v7 = vsel %vm831_vm4, %v820_v36, %v629_v62  ;;  %v764_v59 = vsel %vm736_vm1, %v735_v29, %v586_v8  ;;  %v573_v31 = vrot.slane %v5550_v20, 1  ;;  %v658_v6 = vrot.slane %v5707_v42, 3  ;;  %v4716_v62 = vld [vmem:[#allocation8 + $0x1d8] sm:$0xff]   ;;  %v4723_v12 = vld [vmem:[#allocation8 + $0x310] sm:$0xff]   ;;  %v4724_v8 = vld [vmem:[#allocation8 + $0x1e8] sm:$0xff]  }
 0x20f   :  { %2058 = vmatmul.mubr.bf16.vlgmr.msra.gmra.mrb[8].mxu1 %v5623_v24  ;;  %v886_v27 = vsel %vm864_vm5, %v853_v7, %v642_v53  ;;  %v585_v24 = vrot.slane %v5550_v20, 2  ;;  %v797_v37 = vsel %vm765_vm2, %v764_v59, %v602_v17  ;;  %v601_v39 = vrot.slane %v5604_v4, 5  ;;  %v4717_v53 = vld [vmem:[#allocation8 + $0x348] sm:$0xff]   ;;  %v4729_v36 = vld [vmem:[#allocation8 + $0x360] sm:$0xff]   ;;  %v4732_v7 = vld [vmem:[#allocation8 + $0x1f8] sm:$0xff]  }
 0x210   :  { %2065 = vmatprep.mubr.bf16.mxu1 %v662_v18  ;;  %4283 = vmatpush3.bf16.msra.mxu1 %v4706_v57  ;;  %v5785_v13 = vsel %vm897_vm6, %v886_v27, %v654_v0  ;;  %v830_v46 = vsel %vm798_vm3, %v797_v37, %v618_v22  ;;  %v617_v47 = vrot.slane %v5604_v4, 6  ;;  %v633_v50 = vrot.slane %v5604_v4, 7  ;;  %v4726_v17 = vld [vmem:[#allocation8 + $0x1a8] sm:$0xff]   ;;  %v4727_v18 = vld [vmem:[#allocation8 + $0x318] sm:$0xff]   ;;  %v4731_v22 = vld [vmem:[#allocation8 + $0x320] sm:$0xff]  }
 0x211   :  { %4323 = vmatpush3.bf16.msra.mxu0 %v4707_v9  ;;  %4284 = vmatprep.subr.bf16.mxu1 %v4708_v23  ;;  %v863_v48 = vsel %vm831_vm4, %v830_v46, %v634_v25  ;;  %v732_v15 = vsel %vm691_vm0, %v5550_v20, %v573_v31  ;;  %v645_v55 = vrot.slane %v5704_v19, 2  ;;  %v661_v45 = vrot.slane %v5567_v26, 4  ;;  %v4718_v26 = vld [vmem:[#allocation8 + $0x198] sm:$0xff]   ;;  %v4721_v23 = vld [vmem:[#allocation8 + $0x350] sm:$0xff]   ;;  %v4733_v25 = vld [vmem:[#allocation8 + $0x368] sm:$0xff]  }
 0x212   :  { %4324 = vmatprep.subr.bf16.mxu0 %v4709_v21  ;;  %v896_v14 = vsel %vm864_vm5, %v863_v48, %v646_v44  ;;  %v762_v16 = vsel %vm736_vm1, %v732_v15, %v585_v24  ;;  %v657_v61 = vrot.slane %v5704_v19, 3  ;;  %v668_v57 = vrot.slane %v5657_v10, 4  ;;  %v4728_v21 = vld [vmem:[#allocation8 + $0x1f0] sm:$0xff]   ;;  %v4734_v44 = vld [vmem:[#allocation8 + $0x1b8] sm:$0xff]   ;;  %v4735_v29 = vld [vmem:[#allocation8 + $0x328] sm:$0xff]  }
 0x213   :  { %v5801_v52 = vsel %vm897_vm6, %v896_v14, %v658_v6  ;;  %v795_v20 = vsel %vm765_vm2, %v762_v16, %v601_v39  ;;  %v667_v10 = vrot.slane %v5639_v49, 4  ;;  %v4730_v49 = vld [vmem:[#allocation8 + $0x1b0] sm:$0xff]   ;;  %v4738_v27 = vld [vmem:[#allocation8 + $0x280] sm:$0xff]   ;;  %v4740_v31 = vld [vmem:[#allocation8 + $0x2c8] sm:$0xff]   ;;  %v666_v24 = vrot.slane %v5607_v5, 4 }
 0x214   :  { %4285 = vmatpush3.bf16.msra.mxu1 %v4710_v3  ;;  %v828_v56 = vsel %vm798_vm3, %v795_v20, %v617_v47  ;;  %v4736_v3 = vld [vmem:[#allocation8 + $0x2c0] sm:$0xff]   ;;  %v4739_v59 = vld [vmem:[#allocation8 + $0x330] sm:$0xff]   ;;  %v4743_v6 = vld [vmem:[#allocation8 + $0x338] sm:$0xff]   ;;  %v672_v5 = vrot.slane %v5698_v51, 4  ;;  %v669_v20 = vrot.slane %v5649_v58, 4 }
 0x215   :  { %4325 = vmatpush3.bf16.msra.mxu0 %v4711_v34  ;;  %4286 = vmatprep.subr.bf16.mxu1 %v4712_v35  ;;  %v861_v63 = vsel %vm831_vm4, %v828_v56, %v633_v50  ;;  %v4741_v34 = vld [vmem:[#allocation8 + $0x378] sm:$0xff]   ;;  %v4742_v35 = vld [vmem:[#allocation8 + $0x288] sm:$0xff]   ;;  %v4744_v37 = vld [vmem:[#allocation8 + $0x2d0] sm:$0xff]   ;;  %v671_v50 = vrot.slane %v5686_v43, 4  ;;  %v670_v43 = vrot.slane %v5652_v60, 4 }
 0x216   :  { %4366 = vmatprep.subr.bf16.mxu0 %v4713_v41  ;;  %v894_v0 = vsel %vm864_vm5, %v861_v63, %v645_v55  ;;  %v4745_v39 = vld [vmem:[#allocation8 + $0x290] sm:$0xff]   ;;  %v665_v41 = vrot.slane %v5604_v4, 4  ;;  %v4746_v46 = vld [vmem:[#allocation8 + $0x2d8] sm:$0xff]   ;;  %v4748_v47 = vld [vmem:[#allocation8 + $0x2e0] sm:$0xff]  }
 0x217   :  { %2066 = vmatmul.mubr.bf16.gmra.mrb[12].mxu1 %v661_v45  ;;  %v5812_v9 = vsel %vm897_vm6, %v894_v0, %v657_v61  ;;  %v4749_v48 = vld [vmem:[#allocation8 + $0x2a0] sm:$0xff]   ;;  %v4750_v4 = vld [vmem:[#allocation8 + $0x2e8] sm:$0xff]   ;;  %v4752_v51 = vld [vmem:[#allocation8 + $0x2f0] sm:$0xff]  }
 0x218   :  { %2202 = vmatmul.mubr.bf16.vlgmr.msra.gmra.mrb[40].mxu0 %v5670_v28  ;;  %4287 = vmatpush3.bf16.msra.mxu1 %v4714_v1  ;;  %v4722_v28 = vld [vmem:[#allocation8 + $0x1a0] sm:$0xff]   ;;  %v4751_v15 = vld [vmem:[#allocation8 + $0x2a8] sm:$0xff]   ;;  %v4754_v1 = vld [vmem:[#allocation8 + $0x2f8] sm:$0xff]  }
 0x219   :  { %2153 = vmatprep.mubr.bf16.mxu1 %v5675_v32  ;;  %4367 = vmatpush3.bf16.msra.mxu0 %v4715_v38  ;;  %v4725_v32 = vld [vmem:[#allocation8 + $0x358] sm:$0xff]   ;;  %v4756_v14 = vld [vmem:[#allocation8 + $0x3c0] sm:$0xff]   ;;  %v4758_v16 = vld [vmem:[#allocation8 + $0x3c8] sm:$0xff]  }
 0x21a   :  { %4288 = vmatprep.subr.bf16.mxu1 %v4716_v62  ;;  %4368 = vmatprep.subr.bf16.mxu0 %v4717_v53  ;;  %v4757_v55 = vld [vmem:[#allocation8 + $0x380] sm:$0xff]   ;;  %v4759_v45 = vld [vmem:[#allocation8 + $0x388] sm:$0xff]   ;;  %v4760_v38 = vld [vmem:[#allocation8 + $0x3d0] sm:$0xff]  }
 0x21b   :  { %2209 = vmatprep.mubr.bf16.mxu0 %v668_v57  ;;  %v4761_v61 = vld [vmem:[#allocation8 + $0x390] sm:$0xff]   ;;  %v4762_v62 = vld [vmem:[#allocation8 + $0x3d8] sm:$0xff]   ;;  %v4764_v60 = vld [vmem:[#allocation8 + $0x3e0] sm:$0xff]  }
 0x21c   :  { %4289 = vmatpush3.bf16.msra.mxu1 %v4718_v26  ;;  %v4763_v53 = vld [vmem:[#allocation8 + $0x398] sm:$0xff]   ;;  %v4766_v56 = vld [vmem:[#allocation8 + $0x3e8] sm:$0xff]   ;;  %v4768_v63 = vld [vmem:[#allocation8 + $0x3f0] sm:$0xff]  }
 0x21d   :  { %4369 = vmatpush3.bf16.msra.mxu0 %v4719_v2  ;;  %4290 = vmatprep.subr.bf16.mxu1 %v4720_v40  ;;  %v4767_v57 = vld [vmem:[#allocation8 + $0x3a8] sm:$0xff]   ;;  %v4769_v26 = vld [vmem:[#allocation8 + $0x3b0] sm:$0xff]   ;;  %v4770_v58 = vld [vmem:[#allocation8 + $0x3f8] sm:$0xff]   ;;  %v673_v2 = vrot.slane %v5704_v19, 4 }
 0x21e   :  { %4370 = vmatprep.subr.bf16.mxu0 %v4721_v23  ;;  %v4771_v0 = vld [vmem:[#allocation8 + $0x3b8] sm:$0xff]   ;;  %v4772_v40 = vld [vmem:[#allocation11 + $0x40] sm:$0xff]  }
 0x21f   :  { %v4773_v23 = vld [vmem:[#allocation11 + $0xc0] sm:$0xff]   ;;  %v4782_v19 = vld [vmem:[#allocation11 + $0x10] sm:$0xff]  }
 0x220   :  { %2210 = vmatmul.mubr.bf16.gmra.mrb[44].mxu0 %v667_v10  ;;  %4291 = vmatpush3.bf16.msra.mxu1 %v4722_v28  ;;  %v4774_v10 = vld [vmem:[#allocation11] sm:$0xff]  }
 0x221   :  { %4371 = vmatpush3.bf16.msra.mxu0 %v4723_v12  ;;  %2297 = vmatprep.mubr.bf16.mxu0 %v5727_v54  ;;  %v4737_v54 = vld [vmem:[#allocation8 + $0x370] sm:$0xff]   ;;  %v4775_v28 = vld [vmem:[#allocation11 + $0x80] sm:$0xff]  }
 0x222   :  { %4292 = vmatprep.subr.bf16.mxu1 %v4724_v8  ;;  %4372 = vmatprep.subr.bf16.mxu0 %v4725_v32  ;;  %v4776_v12 = vld [vmem:[#allocation11 + $0x48] sm:$0xff]  }
 0x223   :  { %v4777_v8 = vld [vmem:[#allocation11 + $0xc8] sm:$0xff]  }
 0x224   :  { %4293 = vmatpush3.bf16.msra.mxu1 %v4726_v17  ;;  %v4778_v32 = vld [vmem:[#allocation11 + $0x8] sm:$0xff]  }
 0x225   :  { %4373 = vmatpush3.bf16.msra.mxu0 %v4727_v18  ;;  %4294 = vmatprep.subr.bf16.mxu1 %v4728_v21  ;;  %v4779_v17 = vld [vmem:[#allocation11 + $0x88] sm:$0xff]   ;;  %v4783_v18 = vld [vmem:[#allocation11 + $0x90] sm:$0xff]   ;;  %v4784_v21 = vld [vmem:[#allocation11 + $0x58] sm:$0xff]  }
 0x226   :  { %4374 = vmatprep.subr.bf16.mxu0 %v4729_v36  ;;  %v4785_v36 = vld [vmem:[#allocation11 + $0xd8] sm:$0xff]  }
 0x228   :  { %4295 = vmatpush3.bf16.msra.mxu1 %v4730_v49  ;;  %v4786_v49 = vld [vmem:[#allocation11 + $0x18] sm:$0xff]  }
 0x229   :  { %4375 = vmatpush3.bf16.msra.mxu0 %v4731_v22  ;;  %4296 = vmatprep.subr.bf16.mxu1 %v4732_v7  ;;  %v4787_v22 = vld [vmem:[#allocation11 + $0x98] sm:$0xff]   ;;  %v4788_v7 = vld [vmem:[#allocation11 + $0x60] sm:$0xff]  }
 0x22a   :  { %4376 = vmatprep.subr.bf16.mxu0 %v4733_v25  ;;  %v4789_v25 = vld [vmem:[#allocation11 + $0xe0] sm:$0xff]  }
 0x22c   :  { %4297 = vmatpush3.bf16.msra.mxu1 %v4734_v44  ;;  %v4790_v44 = vld [vmem:[#allocation11 + $0x20] sm:$0xff]  }
 0x22d   :  { %4377 = vmatpush3.bf16.msra.mxu0 %v4735_v29  ;;  %4338 = vmatprep.subr.bf16.mxu1 %v4736_v3  ;;  %v4791_v29 = vld [vmem:[#allocation11 + $0xa0] sm:$0xff]  }
 0x22e   :  { %4378 = vmatprep.subr.bf16.mxu0 %v4737_v54 }
 0x22f   :  { %2154 = vmatmul.mubr.bf16.vlgmr.msra.gmra.mrb[16].mxu1 %v5730_v33  ;;  %v4747_v33 = vld [vmem:[#allocation8 + $0x298] sm:$0xff]  }
 0x230   :  { %2161 = vmatprep.mubr.bf16.mxu1 %v666_v24  ;;  %4339 = vmatpush3.bf16.msra.mxu1 %v4738_v27 }
 0x231   :  { %4379 = vmatpush3.bf16.msra.mxu0 %v4739_v59  ;;  %4340 = vmatprep.subr.bf16.mxu1 %v4740_v31 }
 0x232   :  { %4380 = vmatprep.subr.bf16.mxu0 %v4741_v34  ;;  %v4792_v34 = vld [vmem:[#allocation11 + $0x68] sm:$0xff]  }
 0x234   :  { %4341 = vmatpush3.bf16.msra.mxu1 %v4742_v35  ;;  %v4793_v35 = vld [vmem:[#allocation11 + $0xe8] sm:$0xff]  }
 0x235   :  { %4381 = vmatpush3.bf16.msra.mxu0 %v4743_v6  ;;  %4342 = vmatprep.subr.bf16.mxu1 %v4744_v37 }
 0x236   :  { %4422 = vmatprep.subr.bf16.mxu0 %v4772_v40 }
 0x237   :  { %2162 = vmatmul.mubr.bf16.gmra.mrb[20].mxu1 %v665_v41 }
 0x238   :  { %2298 = vmatmul.mubr.bf16.vlgmr.msra.gmra.mrb[48].mxu0 %v5749_v30  ;;  %4343 = vmatpush3.bf16.msra.mxu1 %v4745_v39  ;;  %v4753_v30 = vld [vmem:[#allocation8 + $0x2b0] sm:$0xff]  }
 0x239   :  { %2249 = vmatprep.mubr.bf16.mxu1 %v5766_v11  ;;  %4344 = vmatprep.subr.bf16.mxu1 %v4746_v46  ;;  %v4755_v11 = vld [vmem:[#allocation8 + $0x2b8] sm:$0xff]  }
 0x23a   :  { %2305 = vmatprep.mubr.bf16.mxu0 %v672_v5  ;;  %4423 = vmatpush3.bf16.msra.mxu0 %v4774_v10 }
 0x23b   :  { %4424 = vmatprep.subr.bf16.mxu0 %v4776_v12 }
 0x23c   :  { %4345 = vmatpush3.bf16.msra.mxu1 %v4747_v33  ;;  %v4794_v33 = vld [vmem:[#allocation11 + $0x28] sm:$0xff]  }
 0x23d   :  { %4346 = vmatprep.subr.bf16.mxu1 %v4748_v47  ;;  %v4795_v47 = vld [vmem:[#allocation11 + $0xa8] sm:$0xff]  }
 0x23e   :  { %4425 = vmatpush3.bf16.msra.mxu0 %v4778_v32 }
 0x240   :  { %4347 = vmatpush3.bf16.msra.mxu1 %v4749_v48  ;;  %2306 = vmatmul.mubr.bf16.gmra.mrb[52].mxu0 %v671_v50  ;;  %v4796_v48 = vld [vmem:[#allocation11 + $0x70] sm:$0xff]   ;;  %v3867_v50 = vld [vmem:[#allocation10] ss:$0 sm:$0xff] }
 0x241   :  { %4348 = vmatprep.subr.bf16.mxu1 %v4750_v4 }
 0x244   :  { %4349 = vmatpush3.bf16.msra.mxu1 %v4751_v15 }
 0x245   :  { %4350 = vmatprep.subr.bf16.mxu1 %v4752_v51 }
 0x248   :  { %4351 = vmatpush3.bf16.msra.mxu1 %v4753_v30  ;;  %v4797_v30 = vld [vmem:[#allocation11 + $0xf0] sm:$0xff]  }
 0x249   :  { %4352 = vmatprep.subr.bf16.mxu1 %v4754_v1 }
 0x24c   :  { %4353 = vmatpush3.bf16.msra.mxu1 %v4755_v11 }
 0x24d   :  { %4394 = vmatprep.subr.bf16.mxu1 %v4756_v14  ;;  %v4798_v14 = vld [vmem:[#allocation11 + $0x30] sm:$0xff]  }
 0x24f   :  { %2250 = vmatmul.mubr.bf16.vlgmr.msra.gmra.mrb[24].mxu1 %v5785_v13  ;;  %v4765_v13 = vld [vmem:[#allocation8 + $0x3a0] sm:$0xff]  }
 0x250   :  { %2257 = vmatprep.mubr.bf16.mxu1 %v670_v43  ;;  %4395 = vmatpush3.bf16.msra.mxu1 %v4757_v55  ;;  %v4799_v55 = vld [vmem:[#allocation11 + $0xb0] sm:$0xff]   ;;  %v4800_v43 = vld [vmem:[#allocation11 + $0x78] sm:$0xff]  }
 0x251   :  { %4396 = vmatprep.subr.bf16.mxu1 %v4758_v16 }
 0x254   :  { %4397 = vmatpush3.bf16.msra.mxu1 %v4759_v45  ;;  %v4801_v45 = vld [vmem:[#allocation11 + $0xf8] sm:$0xff]  }
 0x255   :  { %4398 = vmatprep.subr.bf16.mxu1 %v4760_v38  ;;  %v4802_v38 = vld [vmem:[#allocation11 + $0x38] sm:$0xff]  }
 0x257   :  { %2258 = vmatmul.mubr.bf16.gmra.mrb[28].mxu1 %v669_v20  ;;  %v4803_v20 = vld [vmem:[#allocation11 + $0xb8] sm:$0xff]  }
 0x258   :  { %4399 = vmatpush3.bf16.msra.mxu1 %v4761_v61  ;;  %2345 = vmatprep.mubr.bf16.mxu1 %v5801_v52  ;;  %v674_v52 = vrot.slane %v5707_v42, 4  ;;  %v4780_v42 = vld [vmem:[#allocation11 + $0x50] sm:$0xff]  }
 0x259   :  { %4400 = vmatprep.subr.bf16.mxu1 %v4762_v62  ;;  %4426 = vmatprep.subr.bf16.mxu0 %v4780_v42  ;;  %v4804_v62 = vld [vmem:[#allocation11 + $0x140] sm:$0xff]  }
 0x25a   :  { %4427 = vmatpush3.bf16.msra.mxu0 %v4782_v19 }
 0x25b   :  { %4428 = vmatprep.subr.bf16.mxu0 %v4784_v21 }
 0x25c   :  { %4401 = vmatpush3.bf16.msra.mxu1 %v4763_v53  ;;  %v4805_v53 = vld [vmem:[#allocation11 + $0x1c0] sm:$0xff]  }
 0x25d   :  { %4402 = vmatprep.subr.bf16.mxu1 %v4764_v60 }
 0x25e   :  { %4429 = vmatpush3.bf16.msra.mxu0 %v4786_v49 }
 0x25f   :  { %4430 = vmatprep.subr.bf16.mxu0 %v4788_v7 }
 0x260   :  { %4403 = vmatpush3.bf16.msra.mxu1 %v4765_v13 }
 0x261   :  { %4404 = vmatprep.subr.bf16.mxu1 %v4766_v56 }
 0x262   :  { %4431 = vmatpush3.bf16.msra.mxu0 %v4790_v44 }
 0x263   :  { %4432 = vmatprep.subr.bf16.mxu0 %v4792_v34 }
 0x264   :  { %4405 = vmatpush3.bf16.msra.mxu1 %v4767_v57 }
 0x265   :  { %4406 = vmatprep.subr.bf16.mxu1 %v4768_v63 }
 0x266   :  { %4433 = vmatpush3.bf16.msra.mxu0 %v4794_v33 }
 0x267   :  { %4434 = vmatprep.subr.bf16.mxu0 %v4796_v48 }
 0x268   :  { %4407 = vmatpush3.bf16.msra.mxu1 %v4769_v26 }
 0x269   :  { %4408 = vmatprep.subr.bf16.mxu1 %v4770_v58 }
 0x26a   :  { %4435 = vmatpush3.bf16.msra.mxu0 %v4798_v14 }
 0x26b   :  { %4436 = vmatprep.subr.bf16.mxu0 %v4800_v43 }
 0x26c   :  { %4409 = vmatpush3.bf16.msra.mxu1 %v4771_v0 }
 0x26d   :  { %4444 = vmatprep.subr.bf16.mxu1 %v4773_v23 }
 0x26e   :  { %4437 = vmatpush3.bf16.msra.mxu0 %v4802_v38 }
 0x26f   :  { %2346 = vmatmul.mubr.bf16.vlgmr.msra.gmra.mrb[32].mxu1 %v5812_v9  ;;  %v4781_v9 = vld [vmem:[#allocation11 + $0xd0] sm:$0xff]   ;;  %4466 = vmatprep.subr.bf16.mxu0 %v4804_v62 }
 0x270   :  { %2353 = vmatprep.mubr.bf16.mxu1 %v674_v52  ;;  %4445 = vmatpush3.bf16.msra.mxu1 %v4775_v28 }
 0x271   :  { %4446 = vmatprep.subr.bf16.mxu1 %v4777_v8 }
 0x274   :  { %4447 = vmatpush3.bf16.msra.mxu1 %v4779_v17 }
 0x275   :  { %4448 = vmatprep.subr.bf16.mxu1 %v4781_v9 }
 0x277   :  { %2354 = vmatmul.mubr.bf16.gmra.mrb[36].mxu1 %v673_v2 }
 0x278   :  { %4449 = vmatpush3.bf16.msra.mxu1 %v4783_v18 }
 0x279   :  { %4450 = vmatprep.subr.bf16.mxu1 %v4785_v36 }
 0x27c   :  { %4451 = vmatpush3.bf16.msra.mxu1 %v4787_v22 }
 0x27d   :  { %4452 = vmatprep.subr.bf16.mxu1 %v4789_v25 }
 0x280   :  { %4453 = vmatpush3.bf16.msra.mxu1 %v4791_v29 }
 0x281   :  { %4454 = vmatprep.subr.bf16.mxu1 %v4793_v35 }
 0x284   :  { %4455 = vmatpush3.bf16.msra.mxu1 %v4795_v47 }
 0x285   :  { %4456 = vmatprep.subr.bf16.mxu1 %v4797_v30 }
 0x288   :  { %4457 = vmatpush3.bf16.msra.mxu1 %v4799_v55 }
 0x289   :  { %4458 = vmatprep.subr.bf16.mxu1 %v4801_v45 }
 0x28c   :  { %4459 = vmatpush3.bf16.msra.mxu1 %v4803_v20 }
 0x28d   :  { %4488 = vmatprep.subr.bf16.mxu1 %v4805_v53 }
 0x2c2   :  { %v4214_v3 = vpop.f32.mrb[0].mxu1 }
 0x2c3   :  { %v4215_v54 = vpop.f32.mrb[1].mxu1 }
 0x2c4   :  { %v4216_v27 = vadd.f32 %v4215_v54, %v4214_v3  ;;  %v4217_v59 = vpop.f32.mrb[2].mxu1 }
 0x2c5   :  { %v4218_v31 = vpop.f32.mrb[3].mxu1 }
 0x2c6   :  { %v4219_v24 = vadd.f32 %v4218_v31, %v4217_v59  ;;  %v2012_v58 = vadd.f32 %v4216_v27, %v3867_v50 }
 0x2c8   :  { %v2015_v40 = vadd.f32 %v4219_v24, %v3867_v50 }
 0x2ca   :  { %v4220_v6 = vpop.f32.mrb[4].mxu1 }
 0x2cb   :  { %v4270_v37 = vpop.f32.mrb[32].mxu0  ;;  %v4221_v39 = vpop.f32.mrb[5].mxu1 }
 0x2cc   :  { %v4222_v41 = vadd.f32 %v4221_v39, %v4220_v6  ;;  %v4271_v46 = vpop.f32.mrb[33].mxu0  ;;  %v4223_v5 = vpop.f32.mrb[6].mxu1 }
 0x2cd   :  { %v4272_v4 = vadd.f32 %v4271_v46, %v4270_v37  ;;  %v4273_v15 = vpop.f32.mrb[34].mxu0  ;;  %v4224_v51 = vpop.f32.mrb[7].mxu1 }
 0x2ce   :  { %v2020_v1 = vadd.f32 %v4222_v41, %v3867_v50  ;;  %v4274_v11 = vpop.f32.mrb[35].mxu0 }
 0x2cf   :  { %v4275_v16 = vadd.f32 %v4274_v11, %v4273_v15 }
 0x2d3   :  { %v4276_v61 = vpop.f32.mrb[36].mxu0 }
 0x2d4   :  { %v4277_v60 = vpop.f32.mrb[37].mxu0 }
 0x2d5   :  { %v4278_v13 = vadd.f32 %v4277_v60, %v4276_v61  ;;  %v4279_v56 = vpop.f32.mrb[38].mxu0 }
 0x2d6   :  { %v4280_v57 = vpop.f32.mrb[39].mxu0 }
 0x2e2   :  { %v4242_v63 = vpop.f32.mrb[8].mxu1 }
 0x2e3   :  { %v4243_v26 = vpop.f32.mrb[9].mxu1 }
 0x2e4   :  { %v4244_v0 = vadd.f32 %v4243_v26, %v4242_v63  ;;  %v4245_v52 = vpop.f32.mrb[10].mxu1 }
 0x2e5   :  { %v4246_v2 = vpop.f32.mrb[11].mxu1 }
 0x2e6   :  { %v2060_v23 = vadd.f32 %v4244_v0, %v2012_v58  ;;  %v4247_v10 = vadd.f32 %v4246_v2, %v4245_v52 }
 0x2e8   :  { %v2063_v28 = vadd.f32 %v4247_v10, %v2015_v40  ;;  %v2108_v12 = vadd.f32 %v4272_v4, %v2060_v23 }
 0x2ea   :  { %v4248_v8 = vpop.f32.mrb[12].mxu1  ;;  %v2111_v32 = vadd.f32 %v4275_v16, %v2063_v28 }
 0x2eb   :  { %v4326_v17 = vpop.f32.mrb[40].mxu0  ;;  %v4249_v42 = vpop.f32.mrb[13].mxu1 }
 0x2ec   :  { %v4250_v9 = vadd.f32 %v4249_v42, %v4248_v8  ;;  %v4327_v19 = vpop.f32.mrb[41].mxu0  ;;  %v4251_v18 = vpop.f32.mrb[14].mxu1 }
 0x2ed   :  { %v4328_v21 = vadd.f32 %v4327_v19, %v4326_v17  ;;  %v4329_v36 = vpop.f32.mrb[42].mxu0  ;;  %v4252_v49 = vpop.f32.mrb[15].mxu1 }
 0x2ee   :  { %v2068_v22 = vadd.f32 %v4250_v9, %v2020_v1  ;;  %v4330_v7 = vpop.f32.mrb[43].mxu0 }
 0x2ef   :  { %v4331_v25 = vadd.f32 %v4330_v7, %v4329_v36 }
 0x2f0   :  { %v2116_v44 = vadd.f32 %v4278_v13, %v2068_v22 }
 0x2f3   :  { %v4332_v29 = vpop.f32.mrb[44].mxu0 }
 0x2f4   :  { %v4333_v3 = vpop.f32.mrb[45].mxu0 }
 0x2f5   :  { %v4334_v54 = vadd.f32 %v4333_v3, %v4332_v29  ;;  %v4335_v27 = vpop.f32.mrb[46].mxu0 }
 0x2f6   :  { %v4336_v59 = vpop.f32.mrb[47].mxu0 }
 0x302   :  { %v4298_v31 = vpop.f32.mrb[16].mxu1 }
 0x303   :  { %v4299_v24 = vpop.f32.mrb[17].mxu1 }
 0x304   :  { %v4300_v34 = vadd.f32 %v4299_v24, %v4298_v31  ;;  %v4301_v35 = vpop.f32.mrb[18].mxu1  ;;  %v4806_v24 = vld [vmem:[#allocation11 + $0x100] sm:$0xff]  }
 0x305   :  { %v4302_v6 = vpop.f32.mrb[19].mxu1 }
 0x306   :  { %v2156_v37 = vadd.f32 %v4300_v34, %v2108_v12  ;;  %v4303_v39 = vadd.f32 %v4302_v6, %v4301_v35  ;;  %v4807_v34 = vld [vmem:[#allocation11 + $0x180] sm:$0xff]   ;;  %v4808_v35 = vld [vmem:[#allocation11 + $0x148] sm:$0xff]  }
 0x307   :  { %v4809_v6 = vld [vmem:[#allocation11 + $0x1c8] sm:$0xff]  }
 0x308   :  { %v2159_v41 = vadd.f32 %v4303_v39, %v2111_v32  ;;  %v2204_v46 = vadd.f32 %v4328_v21, %v2156_v37 }
 0x30a   :  { %v4304_v5 = vpop.f32.mrb[20].mxu1  ;;  %v2207_v33 = vadd.f32 %v4331_v25, %v2159_v41  ;;  %v4810_v41 = vld [vmem:[#allocation11 + $0x108] sm:$0xff]  }
 0x30b   :  { %v4382_v47 = vpop.f32.mrb[48].mxu0  ;;  %v4305_v48 = vpop.f32.mrb[21].mxu1 }
 0x30c   :  { %v4306_v50 = vadd.f32 %v4305_v48, %v4304_v5  ;;  %v4383_v4 = vpop.f32.mrb[49].mxu0  ;;  %v4307_v15 = vpop.f32.mrb[22].mxu1  ;;  %v4812_v5 = vld [vmem:[#allocation11 + $0x150] sm:$0xff]  }
 0x30d   :  { %v4384_v51 = vadd.f32 %v4383_v4, %v4382_v47  ;;  %v4385_v30 = vpop.f32.mrb[50].mxu0  ;;  %v4308_v1 = vpop.f32.mrb[23].mxu1  ;;  %v4814_v47 = vld [vmem:[#allocation11 + $0x110] sm:$0xff]   ;;  %v4817_v4 = vld [vmem:[#allocation11 + $0x1d8] sm:$0xff]  }
 0x30e   :  { %v2164_v11 = vadd.f32 %v4306_v50, %v2116_v44  ;;  %v4386_v14 = vpop.f32.mrb[51].mxu0  ;;  %v4815_v48 = vld [vmem:[#allocation11 + $0x190] sm:$0xff]   ;;  %v4816_v50 = vld [vmem:[#allocation11 + $0x158] sm:$0xff]   ;;  %v4821_v1 = vld [vmem:[#allocation11 + $0x1e0] sm:$0xff]  }
 0x30f   :  { %v4387_v55 = vadd.f32 %v4386_v14, %v4385_v30  ;;  %v4818_v15 = vld [vmem:[#allocation11 + $0x118] sm:$0xff]   ;;  %v4820_v30 = vld [vmem:[#allocation11 + $0x160] sm:$0xff]  }
 0x310   :  { %v2212_v16 = vadd.f32 %v4334_v54, %v2164_v11  ;;  %v4822_v11 = vld [vmem:[#allocation11 + $0x120] sm:$0xff]  }
 0x311   :  { %v4823_v14 = vld [vmem:[#allocation11 + $0x1a0] sm:$0xff]  }
 0x313   :  { %v4388_v43 = vpop.f32.mrb[52].mxu0 }
 0x314   :  { %v4389_v45 = vpop.f32.mrb[53].mxu0 }
 0x315   :  { %v4390_v38 = vadd.f32 %v4389_v45, %v4388_v43  ;;  %v4391_v61 = vpop.f32.mrb[54].mxu0  ;;  %v4826_v43 = vld [vmem:[#allocation11 + $0x128] sm:$0xff]  }
 0x316   :  { %v4392_v20 = vpop.f32.mrb[55].mxu0  ;;  %v4827_v45 = vld [vmem:[#allocation11 + $0x1a8] sm:$0xff]   ;;  %v4829_v61 = vld [vmem:[#allocation11 + $0x1f0] sm:$0xff]  }
 0x317   :  { %v4830_v20 = vld [vmem:[#allocation11 + $0x130] sm:$0xff]  }
 0x322   :  { %v4354_v62 = vpop.f32.mrb[24].mxu1 }
 0x323   :  { %v4355_v53 = vpop.f32.mrb[25].mxu1 }
 0x324   :  { %v4356_v60 = vadd.f32 %v4355_v53, %v4354_v62  ;;  %v4357_v13 = vpop.f32.mrb[26].mxu1  ;;  %v4831_v62 = vld [vmem:[#allocation11 + $0x1b0] sm:$0xff]   ;;  %v4832_v53 = vld [vmem:[#allocation11 + $0x178] sm:$0xff]  }
 0x325   :  { %v4358_v56 = vpop.f32.mrb[27].mxu1 }
 0x326   :  { %v2252_v57 = vadd.f32 %v4356_v60, %v2204_v46  ;;  %v4359_v63 = vadd.f32 %v4358_v56, %v4357_v13  ;;  %v4811_v46 = vld [vmem:[#allocation11 + $0x188] sm:$0xff]   ;;  %v4833_v60 = vld [vmem:[#allocation11 + $0x1f8] sm:$0xff]  }
 0x327   :  { %v4834_v13 = vld [vmem:[#allocation11 + $0x138] sm:$0xff]  }
 0x328   :  { %v2255_v26 = vadd.f32 %v4359_v63, %v2207_v33  ;;  %v2300_v58 = vadd.f32 %v4384_v51, %v2252_v57  ;;  %v4813_v33 = vld [vmem:[#allocation11 + $0x1d0] sm:$0xff]   ;;  %v4819_v51 = vld [vmem:[#allocation11 + $0x198] sm:$0xff]   ;;  %v4836_v57 = vld [vmem:[#allocation11 + $0x200] sm:$0xff]  }
 0x329   :  { %v4835_v56 = vld [vmem:[#allocation11 + $0x1b8] sm:$0xff]  }
 0x32a   :  { %v4360_v0 = vpop.f32.mrb[28].mxu1  ;;  %v2303_v52 = vadd.f32 %v4387_v55, %v2255_v26  ;;  %v4824_v55 = vld [vmem:[#allocation11 + $0x168] sm:$0xff]  }
 0x32b   :  { %v4361_v2 = vpop.f32.mrb[29].mxu1 }
 0x32c   :  { %v4362_v40 = vadd.f32 %v4361_v2, %v4360_v0  ;;  %v4363_v23 = vpop.f32.mrb[30].mxu1  ;;  %v4837_v0 = vld [vmem:[#allocation11 + $0x208] sm:$0xff]   ;;  %v4839_v2 = vld [vmem:[#allocation11 + $0x218] sm:$0xff]  }
 0x32d   :  { %v4364_v10 = vpop.f32.mrb[31].mxu1  ;;  %v4841_v23 = vld [vmem:[#allocation11 + $0x228] sm:$0xff]  }
 0x32e   :  { %v2260_v28 = vadd.f32 %v4362_v40, %v2212_v16  ;;  %v4825_v16 = vld [vmem:[#allocation11 + $0x1e8] sm:$0xff]   ;;  %v4840_v40 = vld [vmem:[#allocation11 + $0x220] sm:$0xff]   ;;  %v4842_v10 = vld [vmem:[#allocation11 + $0x230] sm:$0xff]  }
 0x330   :  { %v2308_v12 = vadd.f32 %v4390_v38, %v2260_v28  ;;  %v4828_v38 = vld [vmem:[#allocation11 + $0x170] sm:$0xff]   ;;  %v4843_v28 = vld [vmem:[#allocation11 + $0x238] sm:$0xff]  }
 0x342   :  { %v4410_v8 = vpop.f32.mrb[32].mxu1 }
 0x343   :  { %v4411_v32 = vpop.f32.mrb[33].mxu1 }
 0x344   :  { %v4412_v17 = vadd.f32 %v4411_v32, %v4410_v8  ;;  %v4413_v42 = vpop.f32.mrb[34].mxu1  ;;  %v4844_v32 = vld [vmem:[#allocation14] ss:$16 sps:$4 sm:$0xff]  }
 0x345   :  { %v4414_v9 = vpop.f32.mrb[35].mxu1 }
 0x346   :  { %v2348_v19 = vadd.f32 %v4412_v17, %v2300_v58  ;;  %v4415_v18 = vadd.f32 %v4414_v9, %v4413_v42  ;;  %v5219_v58 = vmov 0.0   ;;  %v4846_v17 = vld [vmem:[#allocation14 + $0x4] ss:$16 sps:$4 sm:$0xff]   ;;  %v4847_v42 = vld [vmem:[#allocation14 + $0x8] ss:$16 sps:$4 sm:$0xff]  }
 0x347   :  { %v4849_v9 = vld [vmem:[#allocation14 + $0xc] ss:$16 sps:$4 sm:$0xff]  }
 0x348   :  { %v2351_v21 = vadd.f32 %v4415_v18, %v2303_v52  ;;  %v2361_v36 = vmax.f32 %v2348_v19, 0.0  ;;  %v4838_v52 = vld [vmem:[#allocation11 + $0x210] sm:$0xff]  }
 0x349   :  { %v4852_v19 = vld [vmem:[#allocation14 + $0x24] ss:$16 sps:$4 sm:$0xff]   ;;  %v4855_v18 = vld [vmem:[#allocation14 + $0x2c] ss:$16 sps:$4 sm:$0xff]  }
 0x34a   :  { %v2362_v49 = vmax.f32 %v2351_v21, 0.0  ;;  %v4416_v22 = vpop.f32.mrb[36].mxu1  ;;  %v4850_v21 = vld [vmem:[#allocation14 + $0x20] ss:$16 sps:$4 sm:$0xff]  }
 0x34b   :  { %v4417_v7 = vpop.f32.mrb[37].mxu1 }
 0x34c   :  { %v5830_v25 = vpack.c.bf16 %v2362_v49, %v2361_v36  ;;  %v4418_v44 = vadd.f32 %v4417_v7, %v4416_v22  ;;  %v4419_v29 = vpop.f32.mrb[38].mxu1  ;;  %v4853_v36 = vld [vmem:[#allocation14 + $0x28] ss:$16 sps:$4 sm:$0xff]   ;;  %v4858_v49 = vld [vmem:[#allocation14 + $0x44] ss:$16 sps:$4 sm:$0xff]  }
 0x34d   :  { %v4420_v3 = vpop.f32.mrb[39].mxu1  ;;  %v4861_v22 = vld [vmem:[#allocation14 + $0x4c] ss:$16 sps:$4 sm:$0xff]   ;;  %v4856_v7 = vld [vmem:[#allocation14 + $0x40] ss:$16 sps:$4 sm:$0xff]  }
 0x34e   :  { %v5832_v54 = vadd.f32 %v4418_v44, %v2308_v12  ;;  %v2367_v27 = vrot.slane %v5830_v25, 1  ;;  %v2371_v59 = vrot.slane %v5830_v25, 3  ;;  %v2369_v31 = vrot.slane %v5830_v25, 2  ;;  %v4864_v44 = vld [vmem:[#allocation14 + $0x64] ss:$16 sps:$4 sm:$0xff]  }
 0x34f   :  { %v2375_v37 = vrot.slane %v5830_v25, 5  ;;  %v2379_v39 = vrot.slane %v5830_v25, 7  ;;  %v2373_v63 = vrot.slane %v5830_v25, 4  ;;  %v2377_v26 = vrot.slane %v5830_v25, 6  ;;  %v4867_v29 = vld [vmem:[#allocation14 + $0x6c] ss:$16 sps:$4 sm:$0xff]  }
 0x350   :  { %2996 = vmatprep.mubr.bf16.mxu0 %v2367_v27  ;;  %3036 = vmatprep.mubr.bf16.mxu1 %v2371_v59  ;;  %v2363_v12 = vmax.f32 %v5832_v54, 0.0  ;;  %v4862_v3 = vld [vmem:[#allocation14 + $0x60] ss:$16 sps:$4 sm:$0xff]   ;;  %v4865_v54 = vld [vmem:[#allocation14 + $0x68] ss:$16 sps:$4 sm:$0xff]  }
 0x351   :  { %2997 = vmatmul.mubr.bf16.vlgmr.msra.gmra.mrb[56].mxu0 %v5830_v25  ;;  %3037 = vmatmul.mubr.bf16.vlgmr.msra.gmra.mrb[40].mxu1 %v2369_v31  ;;  %v4859_v25 = vld [vmem:[#allocation14 + $0x48] ss:$16 sps:$4 sm:$0xff]   ;;  %v4870_v27 = vld [vmem:[#allocation14 + $0x84] ss:$16 sps:$4 sm:$0xff]   ;;  %v4873_v59 = vld [vmem:[#allocation14 + $0x8c] ss:$16 sps:$4 sm:$0xff]  }
 0x352   :  { %4467 = vmatpush3.bf16.msra.mxu0 %v4806_v24  ;;  %4489 = vmatpush3.bf16.msra.mxu1 %v4807_v34  ;;  %v2365_v8 = vpack.c.bf16 %v2363_v12, %v2363_v12  ;;  %v4868_v31 = vld [vmem:[#allocation14 + $0x80] ss:$16 sps:$4 sm:$0xff]   ;;  %v4871_v24 = vld [vmem:[#allocation14 + $0x88] ss:$16 sps:$4 sm:$0xff]   ;;  %v4876_v34 = vld [vmem:[#allocation14 + $0xa4] ss:$16 sps:$4 sm:$0xff]  }
 0x353   :  { %3076 = vmatprep.mubr.bf16.mxu0 %v2375_v37  ;;  %3116 = vmatprep.mubr.bf16.mxu1 %v2379_v39  ;;  %v4877_v37 = vld [vmem:[#allocation14 + $0xa8] ss:$16 sps:$4 sm:$0xff]   ;;  %v4882_v39 = vld [vmem:[#allocation14 + $0xc4] ss:$16 sps:$4 sm:$0xff]  }
 0x354   :  { %4468 = vmatprep.subr.bf16.mxu0 %v4808_v35  ;;  %4490 = vmatprep.subr.bf16.mxu1 %v4809_v6  ;;  %v4879_v35 = vld [vmem:[#allocation14 + $0xac] ss:$16 sps:$4 sm:$0xff]   ;;  %v4874_v6 = vld [vmem:[#allocation14 + $0xa0] ss:$16 sps:$4 sm:$0xff]  }
 0x356   :  { %4469 = vmatpush3.bf16.msra.mxu0 %v4810_v41  ;;  %4491 = vmatpush3.bf16.msra.mxu1 %v4811_v46  ;;  %v4885_v41 = vld [vmem:[#allocation14 + $0xcc] ss:$16 sps:$4 sm:$0xff]   ;;  %v4880_v46 = vld [vmem:[#allocation14 + $0xc0] ss:$16 sps:$4 sm:$0xff]  }
 0x357   :  { %4470 = vmatprep.subr.bf16.mxu0 %v4812_v5  ;;  %4492 = vmatprep.subr.bf16.mxu1 %v4813_v33  ;;  %v4883_v5 = vld [vmem:[#allocation14 + $0xc8] ss:$16 sps:$4 sm:$0xff]   ;;  %v4886_v33 = vld [vmem:[#allocation14 + $0xe0] ss:$16 sps:$4 sm:$0xff]  }
 0x35a   :  { %4471 = vmatpush3.bf16.msra.mxu0 %v4814_v47  ;;  %4493 = vmatpush3.bf16.msra.mxu1 %v4815_v48  ;;  %v4888_v47 = vld [vmem:[#allocation14 + $0xe4] ss:$16 sps:$4 sm:$0xff]   ;;  %v4889_v48 = vld [vmem:[#allocation14 + $0xe8] ss:$16 sps:$4 sm:$0xff]  }
 0x35b   :  { %4472 = vmatprep.subr.bf16.mxu0 %v4816_v50  ;;  %4494 = vmatprep.subr.bf16.mxu1 %v4817_v4  ;;  %v4891_v50 = vld [vmem:[#allocation14 + $0xec] ss:$16 sps:$4 sm:$0xff]   ;;  %v5221_v4 = vmov 0  }
 0x35e   :  { %4473 = vmatpush3.bf16.msra.mxu0 %v4818_v15  ;;  %4495 = vmatpush3.bf16.msra.mxu1 %v4819_v51  ;;  %v4892_v15 = vld [vmem:[#allocation17 + $0x40] sm:$0xff]  }
 0x35f   :  { %4474 = vmatprep.subr.bf16.mxu0 %v4820_v30  ;;  %4496 = vmatprep.subr.bf16.mxu1 %v4821_v1  ;;  %v4893_v51 = vld [vmem:[#allocation17 + $0xc0] sm:$0xff]  }
 0x362   :  { %4475 = vmatpush3.bf16.msra.mxu0 %v4822_v11  ;;  %4497 = vmatpush3.bf16.msra.mxu1 %v4823_v14  ;;  %v3996_v11 = vld [vmem:[#allocation13] ss:$0 sm:$0xff] }
 0x363   :  { %4476 = vmatprep.subr.bf16.mxu0 %v4824_v55  ;;  %4498 = vmatprep.subr.bf16.mxu1 %v4825_v16 }
 0x366   :  { %4477 = vmatpush3.bf16.msra.mxu0 %v4826_v43  ;;  %4499 = vmatpush3.bf16.msra.mxu1 %v4827_v45 }
 0x367   :  { %4478 = vmatprep.subr.bf16.mxu0 %v4828_v38  ;;  %4500 = vmatprep.subr.bf16.mxu1 %v4829_v61 }
 0x36a   :  { %4479 = vmatpush3.bf16.msra.mxu0 %v4830_v20  ;;  %4501 = vmatpush3.bf16.msra.mxu1 %v4831_v62 }
 0x36b   :  { %4480 = vmatprep.subr.bf16.mxu0 %v4832_v53  ;;  %4502 = vmatprep.subr.bf16.mxu1 %v4833_v60 }
 0x36e   :  { %4481 = vmatpush3.bf16.msra.mxu0 %v4834_v13  ;;  %4503 = vmatpush3.bf16.msra.mxu1 %v4835_v56 }
 0x36f   :  { %4563 = vmatprep.subr.bf16.mxu0 %v5219_v58  ;;  %3380 = vmatprep.subr.bf16.mxu1 %v4846_v17 }
 0x371   :  { %3077 = vmatmul.mubr.bf16.vlgmr.msra.gmra.mrb[60].mxu0 %v2373_v63  ;;  %3117 = vmatmul.mubr.bf16.vlgmr.msra.gmra.mrb[44].mxu1 %v2377_v26 }
 0x372   :  { %4564 = vmatpush3.bf16.msra.mxu0 %v4836_v57  ;;  %4579 = vmatprep.mubr.msk.bf16.mxu0 %vm5220_vm7, %v5219_v58 }
 0x373   :  { %4565 = vmatprep.subr.bf16.mxu0 %v5219_v58  ;;  %3381 = vmatpush1.bf16.msra.mxu1 %v4844_v32 }
 0x374   :  { %3382 = vmatprep.subr.bf16.mxu1 %v4852_v19  ;;  %3412 = vmatprep.mubr.bf16.mxu1 %v5221_v4 }
 0x376   :  { %4566 = vmatpush3.bf16.msra.mxu0 %v4837_v0 }
 0x377   :  { %4567 = vmatprep.subr.bf16.mxu0 %v5219_v58  ;;  %3383 = vmatpush1.bf16.msra.mxu1 %v4850_v21  ;;  %v4897_v21 = vld [vmem:[#allocation17 + $0xc8] sm:$0xff]  }
 0x378   :  { %3384 = vmatprep.subr.bf16.mxu1 %v4858_v49  ;;  %v4899_v49 = vld [vmem:[#allocation17 + $0x88] sm:$0xff]  }
 0x37a   :  { %4568 = vmatpush3.bf16.msra.mxu0 %v4838_v52 }
 0x37b   :  { %4569 = vmatprep.subr.bf16.mxu0 %v5219_v58  ;;  %3385 = vmatpush1.bf16.msra.mxu1 %v4856_v7  ;;  %v4901_v7 = vld [vmem:[#allocation17 + $0xd0] sm:$0xff]  }
 0x37c   :  { %3386 = vmatprep.subr.bf16.mxu1 %v4864_v44  ;;  %v4903_v44 = vld [vmem:[#allocation17 + $0x90] sm:$0xff]  }
 0x37e   :  { %4570 = vmatpush3.bf16.msra.mxu0 %v4839_v2 }
 0x37f   :  { %4571 = vmatprep.subr.bf16.mxu0 %v5219_v58  ;;  %3387 = vmatpush1.bf16.msra.mxu1 %v4862_v3  ;;  %v4905_v3 = vld [vmem:[#allocation17 + $0xd8] sm:$0xff]  }
 0x380   :  { %3388 = vmatprep.subr.bf16.mxu1 %v4870_v27  ;;  %v4907_v27 = vld [vmem:[#allocation17 + $0x98] sm:$0xff]  }
 0x382   :  { %4572 = vmatpush3.bf16.msra.mxu0 %v4840_v40 }
 0x383   :  { %4573 = vmatprep.subr.bf16.mxu0 %v5219_v58  ;;  %3389 = vmatpush1.bf16.msra.mxu1 %v4868_v31  ;;  %v4909_v31 = vld [vmem:[#allocation17 + $0xe0] sm:$0xff]  }
 0x384   :  { %3390 = vmatprep.subr.bf16.mxu1 %v4876_v34  ;;  %v4911_v34 = vld [vmem:[#allocation17 + $0xa0] sm:$0xff]  }
 0x386   :  { %4574 = vmatpush3.bf16.msra.mxu0 %v4841_v23 }
 0x387   :  { %4575 = vmatprep.subr.bf16.mxu0 %v5219_v58  ;;  %3391 = vmatpush1.bf16.msra.mxu1 %v4874_v6  ;;  %v4913_v6 = vld [vmem:[#allocation17 + $0xe8] sm:$0xff]  }
 0x388   :  { %3392 = vmatprep.subr.bf16.mxu1 %v4882_v39  ;;  %v4915_v39 = vld [vmem:[#allocation17 + $0xa8] sm:$0xff]  }
 0x38a   :  { %4576 = vmatpush3.bf16.msra.mxu0 %v4842_v10 }
 0x38b   :  { %4577 = vmatprep.subr.bf16.mxu0 %v5219_v58  ;;  %3393 = vmatpush1.bf16.msra.mxu1 %v4880_v46  ;;  %v4917_v46 = vld [vmem:[#allocation17 + $0xf0] sm:$0xff]  }
 0x38c   :  { %3394 = vmatprep.subr.bf16.mxu1 %v4888_v47  ;;  %v4920_v47 = vld [vmem:[#allocation17 + $0x78] sm:$0xff]  }
 0x38e   :  { %4578 = vmatpush3.bf16.msra.mxu0 %v4843_v28 }
 0x38f   :  { %3421 = vmatprep.subr.bf16.mxu0 %v4849_v9  ;;  %3395 = vmatpush1.bf16.msra.mxu1 %v4886_v33  ;;  %v4895_v9 = vld [vmem:[#allocation17 + $0x80] sm:$0xff]   ;;  %v4919_v33 = vld [vmem:[#allocation17 + $0xb0] sm:$0xff]  }
 0x390   :  { %4519 = vmatprep.subr.bf16.mxu1 %v4892_v15  ;;  %v3200_v15 = vlaneseq }
 0x391   :  { %4580 = vmatmul.mubr.bf16.vlgmr.msra.gmra.mrb[64].mxu0 %v2365_v8 }
 0x392   :  { %3422 = vmatpush1.bf16.msra.mxu0 %v4847_v42  ;;  %3453 = vmatprep.mubr.bf16.mxu0 %v5221_v4  ;;  %v4894_v42 = vld [vmem:[#allocation17] sm:$0xff]   ;;  %v4923_v4 = vld [vmem:[#allocation17 + $0xb8] sm:$0xff]  }
 0x393   :  { %3423 = vmatprep.subr.bf16.mxu0 %v4855_v18  ;;  %v4896_v18 = vld [vmem:[#allocation17 + $0x48] sm:$0xff]  }
 0x396   :  { %3424 = vmatpush1.bf16.msra.mxu0 %v4853_v36  ;;  %v4898_v36 = vld [vmem:[#allocation17 + $0x8] sm:$0xff]  }
 0x397   :  { %3425 = vmatprep.subr.bf16.mxu0 %v4861_v22  ;;  %v4900_v22 = vld [vmem:[#allocation17 + $0x50] sm:$0xff]  }
 0x39a   :  { %3426 = vmatpush1.bf16.msra.mxu0 %v4859_v25  ;;  %v4902_v25 = vld [vmem:[#allocation17 + $0x10] sm:$0xff]  }
 0x39b   :  { %3427 = vmatprep.subr.bf16.mxu0 %v4867_v29  ;;  %v4904_v29 = vld [vmem:[#allocation17 + $0x58] sm:$0xff]  }
 0x39e   :  { %3428 = vmatpush1.bf16.msra.mxu0 %v4865_v54  ;;  %v4906_v54 = vld [vmem:[#allocation17 + $0x18] sm:$0xff]  }
 0x39f   :  { %3429 = vmatprep.subr.bf16.mxu0 %v4873_v59  ;;  %v4908_v59 = vld [vmem:[#allocation17 + $0x60] sm:$0xff]  }
 0x3a2   :  { %3430 = vmatpush1.bf16.msra.mxu0 %v4871_v24  ;;  %v4910_v24 = vld [vmem:[#allocation17 + $0x20] sm:$0xff]  }
 0x3a3   :  { %3431 = vmatprep.subr.bf16.mxu0 %v4879_v35  ;;  %v4912_v35 = vld [vmem:[#allocation17 + $0x68] sm:$0xff]  }
 0x3a6   :  { %3432 = vmatpush1.bf16.msra.mxu0 %v4877_v37  ;;  %v4914_v37 = vld [vmem:[#allocation17 + $0x28] sm:$0xff]  }
 0x3a7   :  { %3433 = vmatprep.subr.bf16.mxu0 %v4885_v41  ;;  %v4916_v41 = vld [vmem:[#allocation17 + $0x70] sm:$0xff]  }
 0x3aa   :  { %3434 = vmatpush1.bf16.msra.mxu0 %v4883_v5  ;;  %v4918_v5 = vld [vmem:[#allocation17 + $0x30] sm:$0xff]  }
 0x3ab   :  { %3435 = vmatprep.subr.bf16.mxu0 %v4891_v50  ;;  %v4922_v50 = vld [vmem:[#allocation17 + $0x38] sm:$0xff]  }
 0x3ae   :  { %3436 = vmatpush1.bf16.msra.mxu0 %v4889_v48  ;;  %v4921_v48 = vld [vmem:[#allocation17 + $0xf8] sm:$0xff]  }
 0x3af   :  { %4541 = vmatprep.subr.bf16.mxu0 %v4893_v51  ;;  %v3201_v51 = vshrl.u32 %v3200_v15, 7 }
 0x424   :  { %v4438_v30 = vpop.f32.mrb[56].mxu0  ;;  %v4460_v1 = vpop.f32.mrb[40].mxu1 }
 0x425   :  { %v4439_v14 = vpop.f32.mrb[57].mxu0  ;;  %v4461_v55 = vpop.f32.mrb[41].mxu1 }
 0x426   :  { %v4440_v16 = vadd.f32 %v4439_v14, %v4438_v30  ;;  %v4462_v43 = vadd.f32 %v4461_v55, %v4460_v1  ;;  %v4441_v45 = vpop.f32.mrb[58].mxu0  ;;  %v4463_v38 = vpop.f32.mrb[42].mxu1  ;;  %v3202_v30 = vsub.s32 0, %v3201_v51  ;;  %v3210_v1 = vsub.s32 2, %v3201_v51 }
 0x427   :  { %v4442_v61 = vpop.f32.mrb[59].mxu0  ;;  %v4464_v20 = vpop.f32.mrb[43].mxu1  ;;  %v3206_v14 = vsub.s32 1, %v3201_v51  ;;  %v3214_v55 = vsub.s32 3, %v3201_v51 }
 0x428   :  { %v2999_v62 = vadd.f32 %v4440_v16, %v3996_v11  ;;  %v3198_v11 = vld [vmem:[#allocation16] sm:$0xf] }
 0x429   :  { %v3203_v16 = vrot.slane %v3198_v11, %v3202_v30  ;;  %v3207_v45 = vrot.slane %v3198_v11, %v3206_v14  ;;  %v3215_v38 = vrot.slane %v3198_v11, %v3214_v55 }
 0x42a   :  { %v3039_v53 = vadd.f32 %v4462_v43, %v2999_v62  ;;  %v3211_v43 = vrot.slane %v3198_v11, %v3210_v1 }
 0x444   :  { %v4482_v60 = vpop.f32.mrb[60].mxu0  ;;  %v4504_v13 = vpop.f32.mrb[44].mxu1 }
 0x445   :  { %v4483_v56 = vpop.f32.mrb[61].mxu0  ;;  %v4505_v57 = vpop.f32.mrb[45].mxu1 }
 0x446   :  { %v4484_v63 = vadd.f32 %v4483_v56, %v4482_v60  ;;  %v4506_v26 = vadd.f32 %v4505_v57, %v4504_v13  ;;  %v4485_v58 = vpop.f32.mrb[62].mxu0  ;;  %v4507_v0 = vpop.f32.mrb[46].mxu1 }
 0x447   :  { %v4486_v52 = vpop.f32.mrb[63].mxu0  ;;  %v4508_v2 = vpop.f32.mrb[47].mxu1 }
 0x448   :  { %v3079_v40 = vadd.f32 %v4484_v63, %v3039_v53 }
 0x44a   :  { %v3119_v23 = vadd.f32 %v4506_v26, %v3079_v40 }
 0x464   :  { %v3158_v10 = vpop.f32.mrb[64].mxu0 }
 0x465   :  { %v3159_v28 = vadd.f32 %v3158_v10, %v3119_v23  ;;  %v4581_v12 = vpop.f32.mrb[65].mxu0 }
 0x466   :  { %v3161_v8 = vpop.f32.mrb[66].mxu0 }
 0x467   :  { %v3164_v32 = vmax.f32 %v3159_v28, 0.0  ;;  %v4582_v17 = vpop.f32.mrb[67].mxu0 }
 0x469   :  { %v3165_v19 = vpack.c.bf16 %v3164_v32, %v3164_v32 }
 0x46b   :  { %3413 = vmatmul.mubr.bf16.vlgmr.msra.gmra.mrb[48].mxu1 %v3165_v19  ;;  %3454 = vmatmul.mubr.bf16.vlgmr.msra.gmra.mrb[68].mxu0 %v3165_v19 }
 0x46c   :  { %4520 = vmatpush3.bf16.msra.mxu1 %v4894_v42  ;;  %4542 = vmatpush3.bf16.msra.mxu0 %v4895_v9  ;;  %v4101_v42 = vld [vmem:[#allocation19] ss:$0 sm:$0xff] }
 0x46d   :  { %4521 = vmatprep.subr.bf16.mxu1 %v4896_v18  ;;  %4543 = vmatprep.subr.bf16.mxu0 %v4897_v21 }
 0x470   :  { %4522 = vmatpush3.bf16.msra.mxu1 %v4898_v36  ;;  %4544 = vmatpush3.bf16.msra.mxu0 %v4899_v49 }
 0x471   :  { %4523 = vmatprep.subr.bf16.mxu1 %v4900_v22  ;;  %4545 = vmatprep.subr.bf16.mxu0 %v4901_v7 }
 0x474   :  { %4524 = vmatpush3.bf16.msra.mxu1 %v4902_v25  ;;  %4546 = vmatpush3.bf16.msra.mxu0 %v4903_v44 }
 0x475   :  { %4525 = vmatprep.subr.bf16.mxu1 %v4904_v29  ;;  %4547 = vmatprep.subr.bf16.mxu0 %v4905_v3 }
 0x478   :  { %4526 = vmatpush3.bf16.msra.mxu1 %v4906_v54  ;;  %4548 = vmatpush3.bf16.msra.mxu0 %v4907_v27 }
 0x479   :  { %4527 = vmatprep.subr.bf16.mxu1 %v4908_v59  ;;  %4549 = vmatprep.subr.bf16.mxu0 %v4909_v31 }
 0x47c   :  { %4528 = vmatpush3.bf16.msra.mxu1 %v4910_v24  ;;  %4550 = vmatpush3.bf16.msra.mxu0 %v4911_v34 }
 0x47d   :  { %4529 = vmatprep.subr.bf16.mxu1 %v4912_v35  ;;  %4551 = vmatprep.subr.bf16.mxu0 %v4913_v6 }
 0x480   :  { %4530 = vmatpush3.bf16.msra.mxu1 %v4914_v37  ;;  %4552 = vmatpush3.bf16.msra.mxu0 %v4915_v39 }
 0x481   :  { %4531 = vmatprep.subr.bf16.mxu1 %v4916_v41  ;;  %4553 = vmatprep.subr.bf16.mxu0 %v4917_v46 }
 0x484   :  { %4532 = vmatpush3.bf16.msra.mxu1 %v4918_v5  ;;  %4554 = vmatpush3.bf16.msra.mxu0 %v4919_v33 }
 0x485   :  { %4533 = vmatprep.subr.bf16.mxu1 %v4920_v47  ;;  %4555 = vmatprep.subr.bf16.mxu0 %v4921_v48 }
 0x488   :  { %4534 = vmatpush3.bf16.msra.mxu1 %v4922_v50  ;;  %4556 = vmatpush3.bf16.msra.mxu0 %v4923_v4 }
 0x53e   :  { %v3414_v61 = vpop.f32.mrb[48].mxu1  ;;  %v3455_v20 = vpop.f32.mrb[68].mxu0 }
 0x53f   :  { %v3415_v62 = vadd.f32 %v3414_v61, %v3203_v16  ;;  %v3456_v53 = vadd.f32 %v3455_v20, %v3211_v43  ;;  %v3416_v60 = vpop.f32.mrb[49].mxu1  ;;  %v3457_v13 = vpop.f32.mrb[69].mxu0 }
 0x540   :  { %v3417_v56 = vadd.f32 %v3416_v60, %v3207_v45  ;;  %v3458_v57 = vadd.f32 %v3457_v13, %v3215_v38  ;;  %v3418_v63 = vpop.f32.mrb[50].mxu1  ;;  %v3459_v26 = vpop.f32.mrb[70].mxu0 }
 0x541   :  { %v3462_v58 = vmax.f32 %v3415_v62, 0.0  ;;  %v3464_v0 = vmax.f32 %v3456_v53, 0.0  ;;  %v3419_v52 = vpop.f32.mrb[51].mxu1  ;;  %v3460_v2 = vpop.f32.mrb[71].mxu0 }
 0x542   :  { %v3463_v40 = vmax.f32 %v3417_v56, 0.0  ;;  %v3465_v23 = vmax.f32 %v3458_v57, 0.0 }
 0x543   :  { %v3530_v12 = vpack.c.bf16 %v3462_v58, %v3462_v58  ;;  %v3532_v8 = vpack.c.bf16 %v3464_v0, %v3464_v0 }
 0x544   :  { %v3531_v10 = vpack.c.bf16 %v3463_v40, %v3463_v40  ;;  %v3533_v28 = vpack.c.bf16 %v3465_v23, %v3465_v23 }
 0x546   :  { %3765 = vmatprep.mubr.bf16.mxu1 %v3531_v10  ;;  %3805 = vmatprep.mubr.bf16.mxu0 %v3533_v28 }
 0x547   :  { %3766 = vmatmul.mubr.bf16.vlgmr.msra.gmra.mrb[52].mxu1 %v3530_v12  ;;  %3806 = vmatmul.mubr.bf16.vlgmr.msra.gmra.mrb[72].mxu0 %v3532_v8 }
 0x61a   :  { %v4535_v32 = vpop.f32.mrb[52].mxu1  ;;  %v4557_v17 = vpop.f32.mrb[72].mxu0 }
 0x61b   :  { %v4536_v9 = vpop.f32.mrb[53].mxu1  ;;  %v4558_v19 = vpop.f32.mrb[73].mxu0 }
 0x61c   :  { %v4537_v18 = vadd.f32 %v4536_v9, %v4535_v32  ;;  %v4559_v21 = vadd.f32 %v4558_v19, %v4557_v17  ;;  %v4538_v36 = vpop.f32.mrb[54].mxu1  ;;  %v4560_v49 = vpop.f32.mrb[74].mxu0 }
 0x61d   :  { %v4539_v22 = vpop.f32.mrb[55].mxu1  ;;  %v4561_v7 = vpop.f32.mrb[75].mxu0 }
 0x61e   :  { %v3768_v25 = vadd.f32 %v4537_v18, %v4101_v42 }
 0x620   :  { %v3808_v44 = vadd.f32 %v4559_v21, %v3768_v25 }
 0x622   :  { %3813 = vst [vmem:[#allocation20] sm:$0x3] %v3808_v44 }
 0x623   :  { %5177 = shalt.err (!%p5174_p8)
}
 0x624   :  { %s5178_s17 = scalar_lea.hbm %s5866_s11, 32 }
 0x625   :  { %p5179_p9 = scmp.ne.s32.totalorder %s5866_s11, %s5178_s17  ;;  %p5182_p10 = scmp.lt.u32.totalorder %s5178_s17, %s5866_s11 }
 0x627   :  { %p5184_p11 = pnand %p5182_p10, %p5179_p9 }
 0x629   :  { %5187 = shalt.err (!%p5184_p11)
}
 0x62a   :  { %3823 = dma.vmem_to_hbm [thread:$0]  %s3821_s18, 32, %s5866_s11, [#allocation4]  }
 0x62b   :  { %5200 = dma.done.wait [#allocation4], 32  }
 0x62c   :  { %5201 = vsyncadd [#allocation4], 4294967264 }
 0x62d   :  { %3827 = vsyncpa [#allocation3], 1 }
 0x62e   :  { %3828 = vsyncpa [#allocation6], 1 }
 0x62f   :  { %3829 = vsyncpa [#allocation9], 1 }
 0x630   :  { %3830 = vsyncpa [#allocation12], 1 }
 0x631   :  { %3831 = vsyncpa [#allocation15], 1 }
 0x632   :  { %3832 = vsyncpa [#allocation18], 1 }
 0x633   :  { %3833 = vsyncpa [#allocation4], 1 }

</bundles_post_ra>
